<compile_context>
chip_gen: v7x
topology: tpu7x:2x2x1
jax: 0.10.0
libtpu: 0.0.40
codegen_flags: <defaults>
</compile_context>

<pallas_src>
import jax
import jax.numpy as jnp
import numpy as np
from jax import lax
from jax.experimental import pallas as pl
from jax.experimental.pallas import tpu as pltpu


def _tpu_vmem_config():
    """(vmem_limit_bytes, per-step working-set budget) tuned per TPU generation."""
    try:
        kind = jax.devices()[0].device_kind.lower()
    except Exception:
        kind = ""
    if "v6" in kind or "v5e" in kind or ("v5" in kind and "lite" in kind):
        # v5e / v6e: 128 MiB physical VMEM -> deep tiles, high scoped limit.
        return 96 * 1024 * 1024, 32 * 1024 * 1024
    if "v7" in kind:
        # v7x: 64 MiB / TensorCore -> moderate tiles, explicit accounting.
        return 48 * 1024 * 1024, 16 * 1024 * 1024
    # Unknown / older chips: stay near the default scoped limit.
    return 32 * 1024 * 1024, 8 * 1024 * 1024


def _choose_tile_rows(n_rows, row_bytes, budget_bytes, cap=256, min_steps=1):
    """Largest divisor of n_rows with TH*row_bytes <= budget, TH <= cap, >= min_steps tiles.

    TODO(synk): for awkward (e.g. prime) n_rows this degrades to small TH; a cdiv grid
    with a ragged last tile (or padding Ho) would avoid that.
    """
    th = int(max(1, min(n_rows, cap, budget_bytes // max(1, row_bytes))))
    if min_steps > 1:
        th = min(th, max(1, n_rows // min_steps))
    while n_rows % th:
        th -= 1
    return th


# --------------------------------------------------------------------------------------
# Kernels
# --------------------------------------------------------------------------------------
def _conv_downsample_kernel(xm_ref, xh_ref, w00_ref, w01_ref, w10_ref, w11_ref,
                            b_ref, o_ref):
    """3x3 / stride-2 conv (after torch pad (0,1,0,1)) on phase-merged NHWC input.

    xm_ref: [1, TH, 2, Wq, 2C]  main rows: xm[0,r,ph,q,pw*C+c] = x_pad[2(r0+r)+ph, 2q+pw, c]
    xh_ref: [1, 1,  2, Wq, 2C]  halo s2d row r0+TH (only ph=0 of it is ever read)
    wXY_ref: fused bf16 weights for phase slab (ph=X, pw=Y): [C, n_taps*C]
    b_ref:  [1, C] f32 bias
    o_ref:  [1, TH, Wo, C]
    """
    TH, Wo, C = o_ref.shape[1], o_ref.shape[2], o_ref.shape[3]
    Wq = xm_ref.shape[3]                     # multiple of 8 (wrapper pads q)
    f32 = jnp.float32

    xm = xm_ref[0]                           # (TH, 2, Wq, 2C) bf16
    xh = xh_ref[0]                           # (1,  2, Wq, 2C) bf16

    # (ph, pw, w_ref, taps); tap (oh, ow) corresponds to kernel tap (2*oh+ph, 2*ow+pw).
    slabs = (
        (0, 0, w00_ref, ((0, 0), (0, 1), (1, 0), (1, 1))),
        (0, 1, w01_ref, ((0, 0), (1, 0))),
        (1, 0, w10_ref, ((0, 0), (0, 1))),
        (1, 1, w11_ref, ((0, 0),)),
    )

    acc = b_ref[...].astype(f32).reshape(1, 1, C)   # broadcasts against (TH, Wo, C)
    for ph, pw, w_ref, taps in slabs:
        w = w_ref[...]
        nt = len(taps)
        cols = slice(pw * C, (pw + 1) * C)          # lane-block slice (aligned for C>=128)
        xs = xm[:, ph, :, cols]                     # (TH, Wq, C)
        if any(oh == 1 for oh, _ in taps):          # ph == 0 slabs need the halo row
            xs = jnp.concatenate([xs, xh[:, ph, :, cols]], axis=0)   # (TH+1, Wq, C)
        r_rows = xs.shape[0]
        # Wq % 8 == 0 -> both reshapes are layout-preserving (no sublane repack).
        y = jnp.dot(xs.reshape(r_rows * Wq, C), w,
                    preferred_element_type=f32).reshape(r_rows, Wq, nt * C)
        y_r = None
        if any(ow == 1 for _, ow in taps):
            # ow == 1 taps via an XLU roll instead of a misaligned sublane slice;
            # column q = Wo of y is a zero-pad column, so no wraparound leaks in.
            y_r = pltpu.roll(y, shift=Wq - 1, axis=1)   # y_r[:, j] = y[:, j+1]
        for t, (oh, ow) in enumerate(taps):
            src = y if ow == 0 else y_r
            acc = acc + src[oh:oh + TH, :Wo, t * C:(t + 1) * C]

    o_ref[0] = acc.astype(o_ref.dtype)


def _avgpool_kernel(x_ref, o_ref):
    """2x2 / stride-2 average pool on phase-merged NHWC input.

    x_ref: [1, TH, 2, Wo, 2C] with x[0,i,a,j,b*C+c] = x_in[2i+a, 2j+b, c]
    o_ref: [1, TH, Wo, C]
    """
    C = o_ref.shape[3]
    xb = x_ref[0]                                            # (TH, 2, Wo, 2C)
    s = xb[:, 0, :, :].astype(jnp.float32) + xb[:, 1, :, :].astype(jnp.float32)
    o_ref[0] = ((s[:, :, 0:C] + s[:, :, C:2 * C]) * 0.25).astype(o_ref.dtype)


# --------------------------------------------------------------------------------------
# NHWC wrappers (no boundary transposes)
# --------------------------------------------------------------------------------------
def _downsample_conv_nhwc(x, weight, bias):
    N, H, W, C = x.shape
    assert H % 2 == 0 and W % 2 == 0, "conv path expects even H, W"
    # TODO(synk): odd H/W (supported by the torch module) needs ragged boundary tiling.
    assert weight.shape == (C, C, 3, 3)
    out_dtype = x.dtype
    Ho, Wo = H // 2, W // 2
    Wq = ((Wo + 1 + 7) // 8) * 8             # q padded to a multiple of 8 (layout)
    # Hp = 2*(Ho+1): row Ho of the s2d view is the zero bottom pad; the halo index map
    # below reads it for the last tile, and ph=1 of that row is never read.
    Hp, Wp = 2 * (Ho + 1), 2 * Wq
    xp = jnp.pad(x, ((0, 0), (0, Hp - H), (0, Wp - W), (0, 0))).astype(jnp.bfloat16)
    x4 = xp.reshape(N, Ho + 1, 2, Wq, 2 * C)  # zero-cost phase reshape

    # Fused per-slab weights: taps sharing an input phase slab concatenated along Cout.
    wt = jnp.transpose(weight, (1, 0, 2, 3))  # (Cin, Cout, 3, 3)

    def _fused(ph, pw, taps):
        return jnp.concatenate(
            [wt[:, :, 2 * oh + ph, 2 * ow + pw] for oh, ow in taps], axis=1
        ).astype(jnp.bfloat16)

    w00 = _fused(0, 0, ((0, 0), (0, 1), (1, 0), (1, 1)))     # [C, 4C]
    w01 = _fused(0, 1, ((0, 0), (1, 0)))                      # [C, 2C]
    w10 = _fused(1, 0, ((0, 0), (0, 1)))                      # [C, 2C]
    w11 = _fused(1, 1, ((0, 0),))                             # [C, C]
    b2 = bias.reshape(1, C).astype(jnp.float32)

    vmem_limit, budget = _tpu_vmem_config()
    out_isz = np.dtype(out_dtype).itemsize
    # Per-output-row working set: double-buffered bf16 input rows + widest f32 y slab
    # + f32 accumulator row + double-buffered output rows.
    row_bytes = (2 * (2 * Wq * 2 * C * 2)
                 + Wq * 4 * C * 4
                 + Wo * C * 4
                 + 2 * Wo * C * out_isz)
    min_steps = 2 if N == 1 else 1            # keep both v7x TensorCores busy
    TH = _choose_tile_rows(Ho, row_bytes, budget, min_steps=min_steps)
    nT = Ho // TH

    cost = pl.CostEstimate(
        flops=2 * 9 * C * C * N * Ho * Wo,
        transcendentals=0,
        bytes_accessed=int(x4.size) * 2 + 9 * C * C * 2 + N * Ho * Wo * C * out_isz)

    def build(use_buffered):
        def wspec(shape):
            idx = lambda n, i: (0,) * len(shape)
            if use_buffered:
                # Constant-index blocks: single-buffered (halves their VMEM footprint).
                return pl.BlockSpec(shape, idx, pipeline_mode=pl.Buffered(1))
            return pl.BlockSpec(shape, idx)

        return pl.pallas_call(
            _conv_downsample_kernel,
            out_shape=jax.ShapeDtypeStruct((N, Ho, Wo, C), out_dtype),
            grid=(N, nT),
            in_specs=[
                # main rows of the tile
                pl.BlockSpec((1, TH, 2, Wq, 2 * C), lambda n, i: (n, i, 0, 0, 0)),
                # one-row halo: same HBM array, 1-row view at s2d row (i+1)*TH <= Ho
                pl.BlockSpec((1, 1, 2, Wq, 2 * C),
                             lambda n, i: (n, (i + 1) * TH, 0, 0, 0)),
                wspec((C, 4 * C)),
                wspec((C, 2 * C)),
                wspec((C, 2 * C)),
                wspec((C, C)),
                wspec((1, C)),
            ],
            out_specs=pl.BlockSpec((1, TH, Wo, C), lambda n, i: (n, i, 0, 0)),
            compiler_params=pltpu.CompilerParams(
                dimension_semantics=("parallel", "parallel"),
                vmem_limit_bytes=vmem_limit),
            cost_estimate=cost,
        )

    args = (x4, x4, w00, w01, w10, w11, b2)
    try:
        return build(True)(*args)
    except Exception:
        # pl.Buffered(1) not supported in this jax version -> plain double-buffered specs.
        return build(False)(*args)


def _downsample_pool_nhwc(x):
    N, H, W, C = x.shape
    out_dtype = x.dtype
    Ho, Wo = H // 2, W // 2
    x = x[:, :2 * Ho, :2 * Wo, :]             # torch avg_pool2d floors odd sizes
    x3 = x.reshape(N, Ho, 2, Wo, 2 * C)       # zero-cost phase reshape

    vmem_limit, budget = _tpu_vmem_config()
    row_bytes = (2 * (2 * Wo * 2 * C * x3.dtype.itemsize)
                 + Wo * C * 4
                 + 2 * Wo * C * np.dtype(out_dtype).itemsize)
    min_steps = 2 if N == 1 else 1
    TH = _choose_tile_rows(Ho, row_bytes, budget, min_steps=min_steps)
    nT = Ho // TH

    return pl.pallas_call(
        _avgpool_kernel,
        out_shape=jax.ShapeDtypeStruct((N, Ho, Wo, C), out_dtype),
        grid=(N, nT),
        in_specs=[pl.BlockSpec((1, TH, 2, Wo, 2 * C), lambda n, i: (n, i, 0, 0, 0))],
        out_specs=pl.BlockSpec((1, TH, Wo, C), lambda n, i: (n, i, 0, 0)),
        compiler_params=pltpu.CompilerParams(
            dimension_semantics=("parallel", "parallel"),
            vmem_limit_bytes=vmem_limit),
    )(x3)


def downsample_nhwc(x_nhwc, weight=None, bias=None, *, with_conv=True):
    """NHWC entry point (no boundary transposes) — preferred when the model is NHWC."""
    if with_conv:
        return _downsample_conv_nhwc(x_nhwc, weight, bias)
    return _downsample_pool_nhwc(x_nhwc)


def downsample(x_nchw, weight=None, bias=None, *, with_conv=True):
    """Forward pass of Downsample with the PyTorch NCHW interface."""
    x = jnp.transpose(x_nchw, (0, 2, 3, 1))                  # NCHW -> NHWC (C -> lanes)
    y = downsample_nhwc(x, weight, bias, with_conv=with_conv)
    return jnp.transpose(y, (0, 3, 1, 2))                    # NHWC -> NCHW


# --------------------------------------------------------------------------------------
# Pure-JAX references for verification
# --------------------------------------------------------------------------------------
def _conv_ref(x_nchw, weight, bias):
    # Matches the kernel's bf16-operand / f32-accumulate arithmetic.
    xpad = jnp.pad(x_nchw, ((0, 0), (0, 0), (0, 1), (0, 1)))  # F.pad(x, (0,1,0,1))
    xb = xpad.astype(jnp.bfloat16).astype(jnp.float32)
    wb = weight.astype(jnp.bfloat16).astype(jnp.float32)
    y = lax.conv_general_dilated(
        xb, wb, window_strides=(2, 2), padding="VALID",
        dimension_numbers=("NCHW", "OIHW", "NCHW"),
        precision=lax.Precision.HIGHEST)
    return y + bias.reshape(1, -1, 1, 1)


def _avgpool_ref(x_nchw):
    N, C, H, W = x_nchw.shape
    return x_nchw.reshape(N, C, H // 2, 2, W // 2, 2).mean(axis=(3, 5))


if __name__ == "__main__":
    key = jax.random.PRNGKey(0)
    k_x, k_w, k_b = jax.random.split(key, 3)
    N, C, H, W = 2, 4, 16, 16
    x = jax.random.normal(k_x, (N, C, H, W), jnp.float32)

    # Deterministic params mimicking torch.nn.Conv2d defaults.
    fan_in = C * 3 * 3
    bound = 1.0 / float(np.sqrt(fan_in))
    weight = jax.random.uniform(k_w, (C, C, 3, 3), jnp.float32, -bound, bound)
    bias = jax.random.uniform(k_b, (C,), jnp.float32, -bound, bound)

    # with_conv=True path (pad (0,1,0,1) + 3x3 stride-2 conv)
    y_conv = jax.block_until_ready(downsample(x, weight, bias, with_conv=True))
    # with_conv=False path (2x2 stride-2 average pool)
    y_pool = jax.block_until_ready(downsample(x, with_conv=False))

    assert y_conv.shape == (N, C, H // 2, W // 2)
    assert y_pool.shape == (N, C, H // 2, W // 2)

    np.testing.assert_allclose(np.asarray(y_conv), np.asarray(_conv_ref(x, weight, bias)),
                               atol=1e-3, rtol=1e-3)
    np.testing.assert_allclose(np.asarray(y_pool), np.asarray(_avgpool_ref(x)),
                               atol=1e-5, rtol=1e-5)
    print("KERNEL_OK")
</pallas_src>

<mosaic_0001>
module attributes {stable_mosaic.version = 11 : i64} {
  func.func @_conv_downsample_kernel(%arg0: i32, %arg1: i32, %arg2: memref<1x8x2x16x8xbf16, #tpu.memory_space<vmem>>, %arg3: memref<1x1x2x16x8xbf16, #tpu.memory_space<vmem>>, %arg4: memref<4x16xbf16, #tpu.memory_space<vmem>>, %arg5: memref<4x8xbf16, #tpu.memory_space<vmem>>, %arg6: memref<4x8xbf16, #tpu.memory_space<vmem>>, %arg7: memref<4x4xbf16, #tpu.memory_space<vmem>>, %arg8: memref<1x4xf32, #tpu.memory_space<vmem>>, %arg9: memref<1x8x8x4xf32, #tpu.memory_space<vmem>>) attributes {dimension_semantics = [#tpu.dimension_semantics<parallel>, #tpu.dimension_semantics<parallel>], iteration_bounds = array<i64: 2, 1>, scalar_prefetch = 0 : i64, scratch_operands = 0 : i64, tpu.core_type = #tpu.core_type<tc>, window_params = [{transform_indices = @transform_0, window_bounds = array<i64: 1, 8, 2, 16, 8>}, {transform_indices = @transform_1, window_bounds = array<i64: 1, 1, 2, 16, 8>}, {pipeline_mode = #tpu.pipeline_mode<synchronous>, transform_indices = @transform_2, window_bounds = array<i64: 4, 16>}, {pipeline_mode = #tpu.pipeline_mode<synchronous>, transform_indices = @transform_3, window_bounds = array<i64: 4, 8>}, {pipeline_mode = #tpu.pipeline_mode<synchronous>, transform_indices = @transform_4, window_bounds = array<i64: 4, 8>}, {pipeline_mode = #tpu.pipeline_mode<synchronous>, transform_indices = @transform_5, window_bounds = array<i64: 4, 4>}, {pipeline_mode = #tpu.pipeline_mode<synchronous>, transform_indices = @transform_6, window_bounds = array<i64: 1, 4>}, {transform_indices = @transform_7, window_bounds = array<i64: 1, 8, 8, 4>}]} {
    %c0 = arith.constant 0 : index
    %c0_0 = arith.constant 0 : index
    %c0_1 = arith.constant 0 : index
    %c0_2 = arith.constant 0 : index
    %c0_3 = arith.constant 0 : index
    %0 = vector.load %arg2[%c0, %c0_0, %c0_1, %c0_2, %c0_3] : memref<1x8x2x16x8xbf16, #tpu.memory_space<vmem>>, vector<1x8x2x16x8xbf16>
    %1 = vector.shape_cast %0 : vector<1x8x2x16x8xbf16> to vector<8x2x16x8xbf16>
    %c0_4 = arith.constant 0 : index
    %c0_5 = arith.constant 0 : index
    %c0_6 = arith.constant 0 : index
    %c0_7 = arith.constant 0 : index
    %c0_8 = arith.constant 0 : index
    %2 = vector.load %arg3[%c0_4, %c0_5, %c0_6, %c0_7, %c0_8] : memref<1x1x2x16x8xbf16, #tpu.memory_space<vmem>>, vector<1x1x2x16x8xbf16>
    %3 = vector.shape_cast %2 : vector<1x1x2x16x8xbf16> to vector<1x2x16x8xbf16>
    %c0_9 = arith.constant 0 : index
    %c0_10 = arith.constant 0 : index
    %4 = vector.load %arg8[%c0_9, %c0_10] : memref<1x4xf32, #tpu.memory_space<vmem>>, vector<1x4xf32>
    %5 = vector.shape_cast %4 : vector<1x4xf32> to vector<1x1x4xf32>
    %c0_11 = arith.constant 0 : index
    %c0_12 = arith.constant 0 : index
    %6 = vector.load %arg4[%c0_11, %c0_12] : memref<4x16xbf16, #tpu.memory_space<vmem>>, vector<4x16xbf16>
    %7 = vector.extract_strided_slice %1 {offsets = [0, 0, 0, 0], sizes = [8, 1, 16, 4], strides = [1, 1, 1, 1]} : vector<8x2x16x8xbf16> to vector<8x1x16x4xbf16>
    %8 = vector.shape_cast %7 : vector<8x1x16x4xbf16> to vector<8x16x4xbf16>
    %9 = vector.extract_strided_slice %3 {offsets = [0, 0, 0, 0], sizes = [1, 1, 16, 4], strides = [1, 1, 1, 1]} : vector<1x2x16x8xbf16> to vector<1x1x16x4xbf16>
    %10 = vector.shape_cast %9 : vector<1x1x16x4xbf16> to vector<1x16x4xbf16>
    %11 = tpu.concatenate %8, %10 in 0 : vector<8x16x4xbf16>, vector<1x16x4xbf16> -> vector<9x16x4xbf16>
    %12 = vector.shape_cast %11 : vector<9x16x4xbf16> to vector<144x4xbf16>
    %cst = arith.constant dense<0.000000e+00> : vector<144x16xf32>
    %13 = tpu.matmul %12, %6, %cst {dimension_numbers = #tpu.dot_dimension_numbers<[1], [0], [0], [1], [0, 0, 1, 1], [], []>} : vector<144x4xbf16>, vector<4x16xbf16>, vector<144x16xf32> -> vector<144x16xf32>
    %14 = vector.shape_cast %13 : vector<144x16xf32> to vector<9x16x16xf32>
    %c15_i32 = arith.constant 15 : i32
    %15 = tpu.dynamic_rotate %14 by %c15_i32 dim 1 : vector<9x16x16xf32>, i32 -> vector<9x16x16xf32>
    %16 = vector.extract_strided_slice %14 {offsets = [0, 0, 0], sizes = [8, 8, 4], strides = [1, 1, 1]} : vector<9x16x16xf32> to vector<8x8x4xf32>
    %17 = vector.broadcast %5 : vector<1x1x4xf32> to vector<8x8x4xf32>
    %18 = arith.addf %17, %16 : vector<8x8x4xf32>
    %19 = vector.extract_strided_slice %15 {offsets = [0, 0, 4], sizes = [8, 8, 4], strides = [1, 1, 1]} : vector<9x16x16xf32> to vector<8x8x4xf32>
    %20 = arith.addf %18, %19 : vector<8x8x4xf32>
    %21 = vector.extract_strided_slice %14 {offsets = [1, 0, 8], sizes = [8, 8, 4], strides = [1, 1, 1]} : vector<9x16x16xf32> to vector<8x8x4xf32>
    %22 = arith.addf %20, %21 : vector<8x8x4xf32>
    %23 = vector.extract_strided_slice %15 {offsets = [1, 0, 12], sizes = [8, 8, 4], strides = [1, 1, 1]} : vector<9x16x16xf32> to vector<8x8x4xf32>
    %24 = arith.addf %22, %23 : vector<8x8x4xf32>
    %c0_13 = arith.constant 0 : index
    %c0_14 = arith.constant 0 : index
    %25 = vector.load %arg5[%c0_13, %c0_14] : memref<4x8xbf16, #tpu.memory_space<vmem>>, vector<4x8xbf16>
    %26 = vector.extract_strided_slice %1 {offsets = [0, 0, 0, 4], sizes = [8, 1, 16, 4], strides = [1, 1, 1, 1]} : vector<8x2x16x8xbf16> to vector<8x1x16x4xbf16>
    %27 = vector.shape_cast %26 : vector<8x1x16x4xbf16> to vector<8x16x4xbf16>
    %28 = vector.extract_strided_slice %3 {offsets = [0, 0, 0, 4], sizes = [1, 1, 16, 4], strides = [1, 1, 1, 1]} : vector<1x2x16x8xbf16> to vector<1x1x16x4xbf16>
    %29 = vector.shape_cast %28 : vector<1x1x16x4xbf16> to vector<1x16x4xbf16>
    %30 = tpu.concatenate %27, %29 in 0 : vector<8x16x4xbf16>, vector<1x16x4xbf16> -> vector<9x16x4xbf16>
    %31 = vector.shape_cast %30 : vector<9x16x4xbf16> to vector<144x4xbf16>
    %cst_15 = arith.constant dense<0.000000e+00> : vector<144x8xf32>
    %32 = tpu.matmul %31, %25, %cst_15 {dimension_numbers = #tpu.dot_dimension_numbers<[1], [0], [0], [1], [0, 0, 1, 1], [], []>} : vector<144x4xbf16>, vector<4x8xbf16>, vector<144x8xf32> -> vector<144x8xf32>
    %33 = vector.shape_cast %32 : vector<144x8xf32> to vector<9x16x8xf32>
    %34 = vector.extract_strided_slice %33 {offsets = [0, 0, 0], sizes = [8, 8, 4], strides = [1, 1, 1]} : vector<9x16x8xf32> to vector<8x8x4xf32>
    %35 = arith.addf %24, %34 : vector<8x8x4xf32>
    %36 = vector.extract_strided_slice %33 {offsets = [1, 0, 4], sizes = [8, 8, 4], strides = [1, 1, 1]} : vector<9x16x8xf32> to vector<8x8x4xf32>
    %37 = arith.addf %35, %36 : vector<8x8x4xf32>
    %c0_16 = arith.constant 0 : index
    %c0_17 = arith.constant 0 : index
    %38 = vector.load %arg6[%c0_16, %c0_17] : memref<4x8xbf16, #tpu.memory_space<vmem>>, vector<4x8xbf16>
    %39 = vector.extract_strided_slice %1 {offsets = [0, 1, 0, 0], sizes = [8, 1, 16, 4], strides = [1, 1, 1, 1]} : vector<8x2x16x8xbf16> to vector<8x1x16x4xbf16>
    %40 = vector.shape_cast %39 : vector<8x1x16x4xbf16> to vector<8x16x4xbf16>
    %41 = vector.shape_cast %40 : vector<8x16x4xbf16> to vector<128x4xbf16>
    %cst_18 = arith.constant dense<0.000000e+00> : vector<128x8xf32>
    %42 = tpu.matmul %41, %38, %cst_18 {dimension_numbers = #tpu.dot_dimension_numbers<[1], [0], [0], [1], [0, 0, 1, 1], [], []>} : vector<128x4xbf16>, vector<4x8xbf16>, vector<128x8xf32> -> vector<128x8xf32>
    %43 = vector.shape_cast %42 : vector<128x8xf32> to vector<8x16x8xf32>
    %c15_i32_19 = arith.constant 15 : i32
    %44 = tpu.dynamic_rotate %43 by %c15_i32_19 dim 1 : vector<8x16x8xf32>, i32 -> vector<8x16x8xf32>
    %45 = vector.extract_strided_slice %43 {offsets = [0, 0, 0], sizes = [8, 8, 4], strides = [1, 1, 1]} : vector<8x16x8xf32> to vector<8x8x4xf32>
    %46 = arith.addf %37, %45 : vector<8x8x4xf32>
    %47 = vector.extract_strided_slice %44 {offsets = [0, 0, 4], sizes = [8, 8, 4], strides = [1, 1, 1]} : vector<8x16x8xf32> to vector<8x8x4xf32>
    %48 = arith.addf %46, %47 : vector<8x8x4xf32>
    %c0_20 = arith.constant 0 : index
    %c0_21 = arith.constant 0 : index
    %49 = vector.load %arg7[%c0_20, %c0_21] : memref<4x4xbf16, #tpu.memory_space<vmem>>, vector<4x4xbf16>
    %50 = vector.extract_strided_slice %1 {offsets = [0, 1, 0, 4], sizes = [8, 1, 16, 4], strides = [1, 1, 1, 1]} : vector<8x2x16x8xbf16> to vector<8x1x16x4xbf16>
    %51 = vector.shape_cast %50 : vector<8x1x16x4xbf16> to vector<8x16x4xbf16>
    %52 = vector.shape_cast %51 : vector<8x16x4xbf16> to vector<128x4xbf16>
    %cst_22 = arith.constant dense<0.000000e+00> : vector<128x4xf32>
    %53 = tpu.matmul %52, %49, %cst_22 {dimension_numbers = #tpu.dot_dimension_numbers<[1], [0], [0], [1], [0, 0, 1, 1], [], []>} : vector<128x4xbf16>, vector<4x4xbf16>, vector<128x4xf32> -> vector<128x4xf32>
    %54 = vector.shape_cast %53 : vector<128x4xf32> to vector<8x16x4xf32>
    %55 = vector.extract_strided_slice %54 {offsets = [0, 0, 0], sizes = [8, 8, 4], strides = [1, 1, 1]} : vector<8x16x4xf32> to vector<8x8x4xf32>
    %56 = arith.addf %48, %55 : vector<8x8x4xf32>
    %c0_23 = arith.constant 0 : index
    %c0_24 = arith.constant 0 : index
    %c0_25 = arith.constant 0 : index
    %c0_26 = arith.constant 0 : index
    %57 = vector.load %arg9[%c0_23, %c0_24, %c0_25, %c0_26] : memref<1x8x8x4xf32, #tpu.memory_space<vmem>>, vector<1x8x8x4xf32>
    %58 = vector.shape_cast %57 : vector<1x8x8x4xf32> to vector<8x8x4xf32>
    %59 = vector.shape_cast %56 : vector<8x8x4xf32> to vector<1x8x8x4xf32>
    tpu.vector_store %arg9[%c0_23, %c0_24, %c0_25, %c0_26], %59 {strides = array<i32>} : memref<1x8x8x4xf32, #tpu.memory_space<vmem>>, vector<1x8x8x4xf32>,
    return
  }
  func.func @transform_0(%arg0: i32, %arg1: i32) -> (i32, i32, i32, i32, i32) {
    %c0_i32 = arith.constant 0 : i32
    %c0_i32_0 = arith.constant 0 : i32
    %c0_i32_1 = arith.constant 0 : i32
    %c0_i32_2 = arith.constant 0 : i32
    return %arg0, %arg1, %c0_i32, %c0_i32_0, %c0_i32_1 : i32, i32, i32, i32, i32
  }
  func.func @transform_1(%arg0: i32, %arg1: i32) -> (i32, i32, i32, i32, i32) {
    %c1_i32 = arith.constant 1 : i32
    %0 = arith.addi %arg1, %c1_i32 : i32
    %c8_i32 = arith.constant 8 : i32
    %1 = arith.muli %0, %c8_i32 : i32
    %c0_i32 = arith.constant 0 : i32
    %c0_i32_0 = arith.constant 0 : i32
    %c0_i32_1 = arith.constant 0 : i32
    %c0_i32_2 = arith.constant 0 : i32
    return %arg0, %1, %c0_i32, %c0_i32_0, %c0_i32_1 : i32, i32, i32, i32, i32
  }
  func.func @transform_2(%arg0: i32, %arg1: i32) -> (i32, i32) {
    %c0_i32 = arith.constant 0 : i32
    %c0_i32_0 = arith.constant 0 : i32
    %c0_i32_1 = arith.constant 0 : i32
    return %c0_i32, %c0_i32_0 : i32, i32
  }
  func.func @transform_3(%arg0: i32, %arg1: i32) -> (i32, i32) {
    %c0_i32 = arith.constant 0 : i32
    %c0_i32_0 = arith.constant 0 : i32
    %c0_i32_1 = arith.constant 0 : i32
    return %c0_i32, %c0_i32_0 : i32, i32
  }
  func.func @transform_4(%arg0: i32, %arg1: i32) -> (i32, i32) {
    %c0_i32 = arith.constant 0 : i32
    %c0_i32_0 = arith.constant 0 : i32
    %c0_i32_1 = arith.constant 0 : i32
    return %c0_i32, %c0_i32_0 : i32, i32
  }
  func.func @transform_5(%arg0: i32, %arg1: i32) -> (i32, i32) {
    %c0_i32 = arith.constant 0 : i32
    %c0_i32_0 = arith.constant 0 : i32
    %c0_i32_1 = arith.constant 0 : i32
    return %c0_i32, %c0_i32_0 : i32, i32
  }
  func.func @transform_6(%arg0: i32, %arg1: i32) -> (i32, i32) {
    %c0_i32 = arith.constant 0 : i32
    %c0_i32_0 = arith.constant 0 : i32
    %c0_i32_1 = arith.constant 0 : i32
    return %c0_i32, %c0_i32_0 : i32, i32
  }
  func.func @transform_7(%arg0: i32, %arg1: i32) -> (i32, i32, i32, i32) {
    %c0_i32 = arith.constant 0 : i32
    %c0_i32_0 = arith.constant 0 : i32
    %c0_i32_1 = arith.constant 0 : i32
    return %arg0, %arg1, %c0_i32, %c0_i32_0 : i32, i32, i32, i32
  }
}

module attributes {stable_mosaic.version = 11 : i64} {
  func.func @_conv_downsample_kernel(%arg0: i32, %arg1: i32, %arg2: memref<1x8x2x16x8xbf16, #tpu.memory_space<vmem>>, %arg3: memref<1x1x2x16x8xbf16, #tpu.memory_space<vmem>>, %arg4: memref<4x16xbf16, #tpu.memory_space<vmem>>, %arg5: memref<4x8xbf16, #tpu.memory_space<vmem>>, %arg6: memref<4x8xbf16, #tpu.memory_space<vmem>>, %arg7: memref<4x4xbf16, #tpu.memory_space<vmem>>, %arg8: memref<1x4xf32, #tpu.memory_space<vmem>>, %arg9: memref<1x8x8x4xf32, #tpu.memory_space<vmem>>) attributes {dimension_semantics = [#tpu.dimension_semantics<parallel>, #tpu.dimension_semantics<parallel>], iteration_bounds = array<i64: 2, 1>, scalar_prefetch = 0 : i64, scratch_operands = 0 : i64, tpu.core_type = #tpu.core_type<tc>, window_params = [{transform_indices = @transform_0, window_bounds = array<i64: 1, 8, 2, 16, 8>}, {transform_indices = @transform_1, window_bounds = array<i64: 1, 1, 2, 16, 8>}, {pipeline_mode = #tpu.pipeline_mode<synchronous>, transform_indices = @transform_2, window_bounds = array<i64: 4, 16>}, {pipeline_mode = #tpu.pipeline_mode<synchronous>, transform_indices = @transform_3, window_bounds = array<i64: 4, 8>}, {pipeline_mode = #tpu.pipeline_mode<synchronous>, transform_indices = @transform_4, window_bounds = array<i64: 4, 8>}, {pipeline_mode = #tpu.pipeline_mode<synchronous>, transform_indices = @transform_5, window_bounds = array<i64: 4, 4>}, {pipeline_mode = #tpu.pipeline_mode<synchronous>, transform_indices = @transform_6, window_bounds = array<i64: 1, 4>}, {transform_indices = @transform_7, window_bounds = array<i64: 1, 8, 8, 4>}]} {
    %c0 = arith.constant 0 : index
    %c0_0 = arith.constant 0 : index
    %c0_1 = arith.constant 0 : index
    %c0_2 = arith.constant 0 : index
    %c0_3 = arith.constant 0 : index
    %0 = vector.load %arg2[%c0, %c0_0, %c0_1, %c0_2, %c0_3] : memref<1x8x2x16x8xbf16, #tpu.memory_space<vmem>>, vector<1x8x2x16x8xbf16>
    %1 = vector.shape_cast %0 : vector<1x8x2x16x8xbf16> to vector<8x2x16x8xbf16>
    %c0_4 = arith.constant 0 : index
    %c0_5 = arith.constant 0 : index
    %c0_6 = arith.constant 0 : index
    %c0_7 = arith.constant 0 : index
    %c0_8 = arith.constant 0 : index
    %2 = vector.load %arg3[%c0_4, %c0_5, %c0_6, %c0_7, %c0_8] : memref<1x1x2x16x8xbf16, #tpu.memory_space<vmem>>, vector<1x1x2x16x8xbf16>
    %3 = vector.shape_cast %2 : vector<1x1x2x16x8xbf16> to vector<1x2x16x8xbf16>
    %c0_9 = arith.constant 0 : index
    %c0_10 = arith.constant 0 : index
    %4 = vector.load %arg8[%c0_9, %c0_10] : memref<1x4xf32, #tpu.memory_space<vmem>>, vector<1x4xf32>
    %5 = vector.shape_cast %4 : vector<1x4xf32> to vector<1x1x4xf32>
    %c0_11 = arith.constant 0 : index
    %c0_12 = arith.constant 0 : index
    %6 = vector.load %arg4[%c0_11, %c0_12] : memref<4x16xbf16, #tpu.memory_space<vmem>>, vector<4x16xbf16>
    %7 = vector.extract_strided_slice %1 {offsets = [0, 0, 0, 0], sizes = [8, 1, 16, 4], strides = [1, 1, 1, 1]} : vector<8x2x16x8xbf16> to vector<8x1x16x4xbf16>
    %8 = vector.shape_cast %7 : vector<8x1x16x4xbf16> to vector<8x16x4xbf16>
    %9 = vector.extract_strided_slice %3 {offsets = [0, 0, 0, 0], sizes = [1, 1, 16, 4], strides = [1, 1, 1, 1]} : vector<1x2x16x8xbf16> to vector<1x1x16x4xbf16>
    %10 = vector.shape_cast %9 : vector<1x1x16x4xbf16> to vector<1x16x4xbf16>
    %11 = tpu.concatenate %8, %10 in 0 : vector<8x16x4xbf16>, vector<1x16x4xbf16> -> vector<9x16x4xbf16>
    %12 = vector.shape_cast %11 : vector<9x16x4xbf16> to vector<144x4xbf16>
    %cst = arith.constant dense<0.000000e+00> : vector<144x16xf32>
    %13 = tpu.matmul %12, %6, %cst {dimension_numbers = #tpu.dot_dimension_numbers<[1], [0], [0], [1], [0, 0, 1, 1], [], []>} : vector<144x4xbf16>, vector<4x16xbf16>, vector<144x16xf32> -> vector<144x16xf32>
    %14 = vector.shape_cast %13 : vector<144x16xf32> to vector<9x16x16xf32>
    %c15_i32 = arith.constant 15 : i32
    %15 = tpu.dynamic_rotate %14 by %c15_i32 dim 1 : vector<9x16x16xf32>, i32 -> vector<9x16x16xf32>
    %16 = vector.extract_strided_slice %14 {offsets = [0, 0, 0], sizes = [8, 8, 4], strides = [1, 1, 1]} : vector<9x16x16xf32> to vector<8x8x4xf32>
    %17 = vector.broadcast %5 : vector<1x1x4xf32> to vector<8x8x4xf32>
    %18 = arith.addf %17, %16 : vector<8x8x4xf32>
    %19 = vector.extract_strided_slice %15 {offsets = [0, 0, 4], sizes = [8, 8, 4], strides = [1, 1, 1]} : vector<9x16x16xf32> to vector<8x8x4xf32>
    %20 = arith.addf %18, %19 : vector<8x8x4xf32>
    %21 = vector.extract_strided_slice %14 {offsets = [1, 0, 8], sizes = [8, 8, 4], strides = [1, 1, 1]} : vector<9x16x16xf32> to vector<8x8x4xf32>
    %22 = arith.addf %20, %21 : vector<8x8x4xf32>
    %23 = vector.extract_strided_slice %15 {offsets = [1, 0, 12], sizes = [8, 8, 4], strides = [1, 1, 1]} : vector<9x16x16xf32> to vector<8x8x4xf32>
    %24 = arith.addf %22, %23 : vector<8x8x4xf32>
    %c0_13 = arith.constant 0 : index
    %c0_14 = arith.constant 0 : index
    %25 = vector.load %arg5[%c0_13, %c0_14] : memref<4x8xbf16, #tpu.memory_space<vmem>>, vector<4x8xbf16>
    %26 = vector.extract_strided_slice %1 {offsets = [0, 0, 0, 4], sizes = [8, 1, 16, 4], strides = [1, 1, 1, 1]} : vector<8x2x16x8xbf16> to vector<8x1x16x4xbf16>
    %27 = vector.shape_cast %26 : vector<8x1x16x4xbf16> to vector<8x16x4xbf16>
    %28 = vector.extract_strided_slice %3 {offsets = [0, 0, 0, 4], sizes = [1, 1, 16, 4], strides = [1, 1, 1, 1]} : vector<1x2x16x8xbf16> to vector<1x1x16x4xbf16>
    %29 = vector.shape_cast %28 : vector<1x1x16x4xbf16> to vector<1x16x4xbf16>
    %30 = tpu.concatenate %27, %29 in 0 : vector<8x16x4xbf16>, vector<1x16x4xbf16> -> vector<9x16x4xbf16>
    %31 = vector.shape_cast %30 : vector<9x16x4xbf16> to vector<144x4xbf16>
    %cst_15 = arith.constant dense<0.000000e+00> : vector<144x8xf32>
    %32 = tpu.matmul %31, %25, %cst_15 {dimension_numbers = #tpu.dot_dimension_numbers<[1], [0], [0], [1], [0, 0, 1, 1], [], []>} : vector<144x4xbf16>, vector<4x8xbf16>, vector<144x8xf32> -> vector<144x8xf32>
    %33 = vector.shape_cast %32 : vector<144x8xf32> to vector<9x16x8xf32>
    %34 = vector.extract_strided_slice %33 {offsets = [0, 0, 0], sizes = [8, 8, 4], strides = [1, 1, 1]} : vector<9x16x8xf32> to vector<8x8x4xf32>
    %35 = arith.addf %24, %34 : vector<8x8x4xf32>
    %36 = vector.extract_strided_slice %33 {offsets = [1, 0, 4], sizes = [8, 8, 4], strides = [1, 1, 1]} : vector<9x16x8xf32> to vector<8x8x4xf32>
    %37 = arith.addf %35, %36 : vector<8x8x4xf32>
    %c0_16 = arith.constant 0 : index
    %c0_17 = arith.constant 0 : index
    %38 = vector.load %arg6[%c0_16, %c0_17] : memref<4x8xbf16, #tpu.memory_space<vmem>>, vector<4x8xbf16>
    %39 = vector.extract_strided_slice %1 {offsets = [0, 1, 0, 0], sizes = [8, 1, 16, 4], strides = [1, 1, 1, 1]} : vector<8x2x16x8xbf16> to vector<8x1x16x4xbf16>
    %40 = vector.shape_cast %39 : vector<8x1x16x4xbf16> to vector<8x16x4xbf16>
    %41 = vector.shape_cast %40 : vector<8x16x4xbf16> to vector<128x4xbf16>
    %cst_18 = arith.constant dense<0.000000e+00> : vector<128x8xf32>
    %42 = tpu.matmul %41, %38, %cst_18 {dimension_numbers = #tpu.dot_dimension_numbers<[1], [0], [0], [1], [0, 0, 1, 1], [], []>} : vector<128x4xbf16>, vector<4x8xbf16>, vector<128x8xf32> -> vector<128x8xf32>
    %43 = vector.shape_cast %42 : vector<128x8xf32> to vector<8x16x8xf32>
    %c15_i32_19 = arith.constant 15 : i32
    %44 = tpu.dynamic_rotate %43 by %c15_i32_19 dim 1 : vector<8x16x8xf32>, i32 -> vector<8x16x8xf32>
    %45 = vector.extract_strided_slice %43 {offsets = [0, 0, 0], sizes = [8, 8, 4], strides = [1, 1, 1]} : vector<8x16x8xf32> to vector<8x8x4xf32>
    %46 = arith.addf %37, %45 : vector<8x8x4xf32>
    %47 = vector.extract_strided_slice %44 {offsets = [0, 0, 4], sizes = [8, 8, 4], strides = [1, 1, 1]} : vector<8x16x8xf32> to vector<8x8x4xf32>
    %48 = arith.addf %46, %47 : vector<8x8x4xf32>
    %c0_20 = arith.constant 0 : index
    %c0_21 = arith.constant 0 : index
    %49 = vector.load %arg7[%c0_20, %c0_21] : memref<4x4xbf16, #tpu.memory_space<vmem>>, vector<4x4xbf16>
    %50 = vector.extract_strided_slice %1 {offsets = [0, 1, 0, 4], sizes = [8, 1, 16, 4], strides = [1, 1, 1, 1]} : vector<8x2x16x8xbf16> to vector<8x1x16x4xbf16>
    %51 = vector.shape_cast %50 : vector<8x1x16x4xbf16> to vector<8x16x4xbf16>
    %52 = vector.shape_cast %51 : vector<8x16x4xbf16> to vector<128x4xbf16>
    %cst_22 = arith.constant dense<0.000000e+00> : vector<128x4xf32>
    %53 = tpu.matmul %52, %49, %cst_22 {dimension_numbers = #tpu.dot_dimension_numbers<[1], [0], [0], [1], [0, 0, 1, 1], [], []>} : vector<128x4xbf16>, vector<4x4xbf16>, vector<128x4xf32> -> vector<128x4xf32>
    %54 = vector.shape_cast %53 : vector<128x4xf32> to vector<8x16x4xf32>
    %55 = vector.extract_strided_slice %54 {offsets = [0, 0, 0], sizes = [8, 8, 4], strides = [1, 1, 1]} : vector<8x16x4xf32> to vector<8x8x4xf32>
    %56 = arith.addf %48, %55 : vector<8x8x4xf32>
    %c0_23 = arith.constant 0 : index
    %c0_24 = arith.constant 0 : index
    %c0_25 = arith.constant 0 : index
    %c0_26 = arith.constant 0 : index
    %57 = vector.load %arg9[%c0_23, %c0_24, %c0_25, %c0_26] : memref<1x8x8x4xf32, #tpu.memory_space<vmem>>, vector<1x8x8x4xf32>
    %58 = vector.shape_cast %57 : vector<1x8x8x4xf32> to vector<8x8x4xf32>
    %59 = vector.shape_cast %56 : vector<8x8x4xf32> to vector<1x8x8x4xf32>
    tpu.vector_store %arg9[%c0_23, %c0_24, %c0_25, %c0_26], %59 {strides = array<i32>} : memref<1x8x8x4xf32, #tpu.memory_space<vmem>>, vector<1x8x8x4xf32>,
    return
  }
  func.func @transform_0(%arg0: i32, %arg1: i32) -> (i32, i32, i32, i32, i32) {
    %c0_i32 = arith.constant 0 : i32
    %c0_i32_0 = arith.constant 0 : i32
    %c0_i32_1 = arith.constant 0 : i32
    %c0_i32_2 = arith.constant 0 : i32
    return %arg0, %arg1, %c0_i32, %c0_i32_0, %c0_i32_1 : i32, i32, i32, i32, i32
  }
  func.func @transform_1(%arg0: i32, %arg1: i32) -> (i32, i32, i32, i32, i32) {
    %c1_i32 = arith.constant 1 : i32
    %0 = arith.addi %arg1, %c1_i32 : i32
    %c8_i32 = arith.constant 8 : i32
    %1 = arith.muli %0, %c8_i32 : i32
    %c0_i32 = arith.constant 0 : i32
    %c0_i32_0 = arith.constant 0 : i32
    %c0_i32_1 = arith.constant 0 : i32
    %c0_i32_2 = arith.constant 0 : i32
    return %arg0, %1, %c0_i32, %c0_i32_0, %c0_i32_1 : i32, i32, i32, i32, i32
  }
  func.func @transform_2(%arg0: i32, %arg1: i32) -> (i32, i32) {
    %c0_i32 = arith.constant 0 : i32
    %c0_i32_0 = arith.constant 0 : i32
    %c0_i32_1 = arith.constant 0 : i32
    return %c0_i32, %c0_i32_0 : i32, i32
  }
  func.func @transform_3(%arg0: i32, %arg1: i32) -> (i32, i32) {
    %c0_i32 = arith.constant 0 : i32
    %c0_i32_0 = arith.constant 0 : i32
    %c0_i32_1 = arith.constant 0 : i32
    return %c0_i32, %c0_i32_0 : i32, i32
  }
  func.func @transform_4(%arg0: i32, %arg1: i32) -> (i32, i32) {
    %c0_i32 = arith.constant 0 : i32
    %c0_i32_0 = arith.constant 0 : i32
    %c0_i32_1 = arith.constant 0 : i32
    return %c0_i32, %c0_i32_0 : i32, i32
  }
  func.func @transform_5(%arg0: i32, %arg1: i32) -> (i32, i32) {
    %c0_i32 = arith.constant 0 : i32
    %c0_i32_0 = arith.constant 0 : i32
    %c0_i32_1 = arith.constant 0 : i32
    return %c0_i32, %c0_i32_0 : i32, i32
  }
  func.func @transform_6(%arg0: i32, %arg1: i32) -> (i32, i32) {
    %c0_i32 = arith.constant 0 : i32
    %c0_i32_0 = arith.constant 0 : i32
    %c0_i32_1 = arith.constant 0 : i32
    return %c0_i32, %c0_i32_0 : i32, i32
  }
  func.func @transform_7(%arg0: i32, %arg1: i32) -> (i32, i32, i32, i32) {
    %c0_i32 = arith.constant 0 : i32
    %c0_i32_0 = arith.constant 0 : i32
    %c0_i32_1 = arith.constant 0 : i32
    return %arg0, %arg1, %c0_i32, %c0_i32_0 : i32, i32, i32, i32
  }
}

</mosaic_0001>

<bundles_post_ra>
// kernel: tpu_custom_call.1
= control target key start
LH: loop header
LB: loop body
LE: loop exit
PB: predicated region body
PF: predicated region fallthrough
CT: control target
= control target key end

     0   :  { %s1801_s24 = smov 0   ;;  %s1803_s25 = smov 0   ;;  %s2175_s0 = inlined_call_operand.vmem [shape: bf16[2,9,2,16,8], index: 0, kind: input, shape index: {}]   ;;  %s2176_s1 = inlined_call_operand.vmem [shape: bf16[2,9,2,16,8], index: 1, kind: input, shape index: {}]   ;;  %s2177_s2 = inlined_call_operand.vmem [shape: bf16[4,16], index: 2, kind: input, shape index: {}]   ;;  %s2178_s3 = inlined_call_operand.vmem [shape: bf16[4,8], index: 3, kind: input, shape index: {}]   ;;  %s2179_s4 = inlined_call_operand.vmem [shape: bf16[4,8], index: 4, kind: input, shape index: {}]   ;;  %s2180_s5 = inlined_call_operand.vmem [shape: bf16[4,4], index: 5, kind: input, shape index: {}]   ;;  %s2181_s6 = inlined_call_operand.vmem [shape: f32[1,4], index: 6, kind: input, shape index: {}]   ;;  %s2182_s7 = inlined_call_operand.vmem [shape: f32[2,8,8,4], index: 7, kind: output, shape index: {}]  }
   0x1   :  { %s1805_s26 = smov 0  }
   0x2 LB: > { %s29_s27 = sadd.s32 1, %s1750_s25  ;;  %p1469_p0 = scmp.ge.s32.totalorder %s1754_s26, 1  ;;  %s1754_s26 = sphi %s1805_s26, %s17_s26   ;;  %s1750_s25 = sphi %s1803_s25, %s2184_s25   ;;  %s1746_s24 = sphi %s1801_s24, %s2183_s24  }
   0x3   : > { %p31_p1 = scmp.ge.s32.totalorder %s29_s27, 2  ;;  %p295_p2 = scmp.lt.s32.totalorder %s1754_s26, 3 }
   0x5   : > { %s2186_s27 = smov (%p31_p1, %s29_s27), 0  ;;  %p296_p3 = pnand %p1469_p0, %p295_p2 }
   0x6   : > { %v435_v0 = vld [vmem:[%s2177_s2] sm:$0x3] (!%p296_p3)  ;;  %vm509_vm0 = vcmask (!%p296_p3), 1041408   ;;  %p360_p4 = scmp.lt.s32.totalorder (!%p296_p3), %s1746_s24, 1  ;;  %v1756_v1 = vmov (!%p296_p3), 0.0   ;;  %vm1757_vm1 = vmmov (!%p296_p3), 0   ;;  %v636_v42 = vlaneseq (!%p296_p3) }
   0x7   : > { %299 = sbr.rel (%p296_p3) target bundleno = 534 (0x216), region = 48  ;;  %1569 = vmatprep.subr.bf16.mxu0 (!%p296_p3), %v1756_v1  ;;  %v511_v2 = vsel (!%p296_p3), %vm509_vm0, %v435_v0, 0  ;;  %1571 = vmatprep.mubr.msk.bf16.mxu0 (!%p296_p3), %vm1757_vm1, %v1756_v1  ;;  %v968_v3 = vld [vmem:[%s2179_s4] sm:$0x3] (!%p296_p3)  ;;  %vm481_vm2 = vcmask (!%p296_p3), 31744   ;;  %s1758_s15 = smov (!%p296_p3), 124  }
   0x8   : > { %1570 = vmatpush3.bf16.msra.mxu0 (!%p296_p3), %v511_v2  ;;  %1607 = vmatprep.subr.bf16.mxu1 (!%p296_p3), %v1756_v1  ;;  %v775_v4 = vld [vmem:[%s2178_s3] sm:$0x3] (!%p296_p3)  ;;  %v1034_v7 = vsel (!%p296_p3), %vm509_vm0, %v968_v3, 0  ;;  %v1952_v44 = vshrl.u32 (!%p296_p3), %v636_v42, 7  ;;  %s1759_s22 = smov (!%p296_p3), 120   ;;  %s1760_s23 = smov (!%p296_p3), 116  }
   0x9   : > { %1681 = vmatprep.subr.msk.bf16.mxu0 (!%p296_p3), %vm509_vm0, %v968_v3  ;;  %v822_v5 = vsel (!%p296_p3), %vm509_vm0, %v775_v4, 0  ;;  %1609 = vmatprep.mubr.msk.bf16.mxu1 (!%p296_p3), %vm1757_vm1, %v1756_v1  ;;  %v1205_v24 = vld [vmem:[%s2180_s5] sm:$0x3] (!%p296_p3) }
   0xa   : > { %1608 = vmatpush3.bf16.msra.mxu1 (!%p296_p3), %v822_v5  ;;  %v1247_v25 = vsel (!%p296_p3), %vm509_vm0, %v1205_v24, 0  ;;  %vm638_vm3 = vcmp.lt.s32.totalorder (!%p296_p3), %v1952_v44, 7 }
   0xb   : > { %1682 = vmatprep.subr.msk.bf16.mxu1 (!%p296_p3), %vm509_vm0, %v1205_v24 }
   0xe   : > { %s2188_s24 = smov (!%p360_p4, %s1746_s24), 1 }
   0xf   : > { %s1683_s11 = smul.u32 144, %s2188_s24  ;;  %s1530_s30 = sshll.u32 %s2188_s24, 6 }
  0x10   : > { %s2134_s10 = scalar_lea.vmem %s2182_s7, %s1530_s30 }
  0x11   : > { %s1843_s14 = scalar_lea.vmem %s2175_s0, %s1683_s11  ;;  %s1529_s16 = sadd.s32 128, %s1683_s11 }
  0x12   : > { %v1715_v6 = vld [vmem:[%s1843_s14] sm:$0xff]   ;;  %v1716_v8 = vld [vmem:[%s1843_s14 + $0x10] sm:$0xff]   ;;  %s386_s19 = scalar_lea.vmem %s2176_s1, %s1529_s16  ;;  %v1724_v16 = vld [vmem:[%s1843_s14 + $0x8] sm:$0xff]  }
  0x13   : > { %776 = vrot.lane.b32.xlu0 %v1715_v6, %s1758_s15  ;;  %1572 = vmatmul.mubr.msk.bf16.vlgmr.msra.gmra.mrb[0].mxu0 %vm481_vm2, %v1715_v6  ;;  %v1717_v9 = vld [vmem:[%s1843_s14 + $0x20] sm:$0xff]   ;;  %v1718_v10 = vld [vmem:[%s1843_s14 + $0x30] sm:$0xff]   ;;  %v1725_v17 = vld [vmem:[%s1843_s14 + $0x18] sm:$0xff]  }
  0x14   : > { %1575 = vmatprep.mubr.msk.bf16.mxu0 %vm1757_vm1, %v1756_v1  ;;  %1646 = vmatpush3.bf16.msra.mxu0 %v1034_v7  ;;  %v1719_v11 = vld [vmem:[%s1843_s14 + $0x40] sm:$0xff]   ;;  %v1720_v12 = vld [vmem:[%s1843_s14 + $0x50] sm:$0xff]   ;;  %v1726_v18 = vld [vmem:[%s1843_s14 + $0x28] sm:$0xff]  }
  0x15   : > { %780 = vrot.lane.b32.xlu1 %v1717_v9, %s1758_s15  ;;  %v1721_v13 = vld [vmem:[%s1843_s14 + $0x60] sm:$0xff]   ;;  %v1722_v14 = vld [vmem:[%s1843_s14 + $0x70] sm:$0xff]   ;;  %v1727_v19 = vld [vmem:[%s1843_s14 + $0x38] sm:$0xff]  }
  0x16   : > { %v1723_v15 = vld [vmem:[%s386_s19] sm:$0xff]   ;;  %v1728_v20 = vld [vmem:[%s1843_s14 + $0x48] sm:$0xff]   ;;  %v1729_v21 = vld [vmem:[%s1843_s14 + $0x58] sm:$0xff]  }
  0x17   : > { %778 = vrot.lane.b32.xlu0 %v1716_v8, %s1758_s15  ;;  %v1730_v22 = vld [vmem:[%s1843_s14 + $0x68] sm:$0xff]   ;;  %v1731_v23 = vld [vmem:[%s1843_s14 + $0x78] sm:$0xff]  }
  0x19   : > { %782 = vrot.lane.b32.xlu1 %v1718_v10, %s1758_s15 }
  0x1b   : > { %1576 = vmatmul.mubr.msk.bf16.gmra.mrb[4].mxu0 %vm481_vm2, %v1716_v8  ;;  %784 = vrot.lane.b32.xlu0 %v1719_v11, %s1758_s15 }
  0x1c   : > { %1579 = vmatprep.mubr.msk.bf16.mxu0 %vm1757_vm1, %v1756_v1 }
  0x1d   : > { %786 = vrot.lane.b32.xlu1 %v1720_v12, %s1758_s15 }
  0x1f   : > { %788 = vrot.lane.b32.xlu0 %v1721_v13, %s1758_s15 }
  0x21   : > { %790 = vrot.lane.b32.xlu1 %v1722_v14, %s1758_s15 }
  0x23   : > { %1580 = vmatmul.mubr.msk.bf16.gmra.mrb[8].mxu0 %vm481_vm2, %v1717_v9  ;;  %792 = vrot.lane.b32.xlu0 %v1723_v15, %s1758_s15 }
  0x24   : > { %1583 = vmatprep.mubr.msk.bf16.mxu0 %vm1757_vm1, %v1756_v1 }
  0x25   : > { %1206 = vrot.lane.b32.xlu1 %v1724_v16, %s1758_s15 }
  0x27   : > { %1208 = vrot.lane.b32.xlu0 %v1725_v17, %s1758_s15 }
  0x29   : > { %1210 = vrot.lane.b32.xlu1 %v1726_v18, %s1758_s15 }
  0x2b   : > { %1584 = vmatmul.mubr.msk.bf16.gmra.mrb[12].mxu0 %vm481_vm2, %v1718_v10  ;;  %1212 = vrot.lane.b32.xlu0 %v1727_v19, %s1758_s15 }
  0x2c   : > { %1587 = vmatprep.mubr.msk.bf16.mxu0 %vm1757_vm1, %v1756_v1 }
  0x2d   : > { %1214 = vrot.lane.b32.xlu1 %v1728_v20, %s1758_s15 }
  0x2f   : > { %1216 = vrot.lane.b32.xlu0 %v1729_v21, %s1758_s15 }
  0x31   : > { %1218 = vrot.lane.b32.xlu1 %v1730_v22, %s1758_s15 }
  0x33   : > { %1588 = vmatmul.mubr.msk.bf16.gmra.mrb[16].mxu0 %vm481_vm2, %v1719_v11  ;;  %1220 = vrot.lane.b32.xlu0 %v1731_v23, %s1758_s15 }
  0x34   : > { %1591 = vmatprep.mubr.msk.bf16.mxu0 %vm1757_vm1, %v1756_v1 }
  0x3b   : > { %1592 = vmatmul.mubr.msk.bf16.gmra.mrb[20].mxu0 %vm481_vm2, %v1720_v12 }
  0x3c   : > { %1595 = vmatprep.mubr.msk.bf16.mxu0 %vm1757_vm1, %v1756_v1 }
  0x43   : > { %1596 = vmatmul.mubr.msk.bf16.gmra.mrb[24].mxu0 %vm481_vm2, %v1721_v13 }
  0x44   : > { %1599 = vmatprep.mubr.msk.bf16.mxu0 %vm1757_vm1, %v1756_v1 }
  0x4b   : > { %1600 = vmatmul.mubr.msk.bf16.gmra.mrb[28].mxu0 %vm481_vm2, %v1722_v14 }
  0x4c   : > { %1603 = vmatprep.mubr.msk.bf16.mxu0 %vm1757_vm1, %v1756_v1 }
  0x53   : > { %1604 = vmatmul.mubr.msk.bf16.gmra.mrb[32].mxu0 %vm481_vm2, %v1723_v15 }
  0x54   : > { %1647 = vmatprep.mubr.msk.bf16.mxu0 %vm481_vm2, %v1724_v16 }
  0x5b   : > { %1648 = vmatmul.mubr.msk.bf16.vlgmr.msra.gmra.mrb[36].mxu0 %vm481_vm2, %v1725_v17 }
  0x5c   : > { %1651 = vmatprep.mubr.msk.bf16.mxu0 %vm481_vm2, %v1726_v18 }
  0x63   : > { %1652 = vmatmul.mubr.msk.bf16.gmra.mrb[40].mxu0 %vm481_vm2, %v1727_v19 }
  0x64   : > { %1655 = vmatprep.mubr.msk.bf16.mxu0 %vm481_vm2, %v1728_v20 }
  0x6b   : > { %1656 = vmatmul.mubr.msk.bf16.gmra.mrb[44].mxu0 %vm481_vm2, %v1729_v21 }
  0x6c   : > { %1659 = vmatprep.mubr.msk.bf16.mxu0 %vm481_vm2, %v1730_v22 }
  0x73   : > { %1660 = vmatmul.mubr.msk.bf16.gmra.mrb[48].mxu0 %vm481_vm2, %v1731_v23 }
  0x85   : > { %v777_v26 = vpop.permute.xlu0 %776 }
  0x86   : > { %1610 = vmatmul.mubr.msk.bf16.vlgmr.msra.gmra.mrb[0].mxu1 %vm481_vm2, %v777_v26 }
  0x87   : > { %1613 = vmatprep.mubr.msk.bf16.mxu1 %vm1757_vm1, %v1756_v1  ;;  %1664 = vmatpush3.bf16.msra.mxu1 %v1247_v25  ;;  %v781_v28 = vpop.permute.xlu1 %780 }
  0x89   : > { %v779_v27 = vpop.permute.xlu0 %778 }
  0x8b   : > { %v783_v29 = vpop.permute.xlu1 %782 }
  0x8d   : > { %v785_v30 = vpop.permute.xlu0 %784 }
  0x8e   : > { %1614 = vmatmul.mubr.msk.bf16.gmra.mrb[4].mxu1 %vm481_vm2, %v779_v27 }
  0x8f   : > { %1617 = vmatprep.mubr.msk.bf16.mxu1 %vm1757_vm1, %v1756_v1  ;;  %v787_v31 = vpop.permute.xlu1 %786 }
  0x91   : > { %v789_v32 = vpop.permute.xlu0 %788 }
  0x93   : > { %v791_v33 = vpop.permute.xlu1 %790 }
  0x95   : > { %v793_v34 = vpop.permute.xlu0 %792 }
  0x96   : > { %1618 = vmatmul.mubr.msk.bf16.gmra.mrb[8].mxu1 %vm481_vm2, %v781_v28 }
  0x97   : > { %1621 = vmatprep.mubr.msk.bf16.mxu1 %vm1757_vm1, %v1756_v1  ;;  %v1207_v35 = vpop.permute.xlu1 %1206 }
  0x99   : > { %v1209_v36 = vpop.permute.xlu0 %1208 }
  0x9b   : > { %v1211_v37 = vpop.permute.xlu1 %1210 }
  0x9d   : > { %v1213_v38 = vpop.permute.xlu0 %1212 }
  0x9e   : > { %1622 = vmatmul.mubr.msk.bf16.gmra.mrb[12].mxu1 %vm481_vm2, %v783_v29 }
  0x9f   : > { %1625 = vmatprep.mubr.msk.bf16.mxu1 %vm1757_vm1, %v1756_v1  ;;  %v1215_v39 = vpop.permute.xlu1 %1214 }
  0xa1   : > { %v1217_v40 = vpop.permute.xlu0 %1216 }
  0xa3   : > { %v1219_v41 = vpop.permute.xlu1 %1218 }
  0xa5   : > { %v1221_v43 = vpop.permute.xlu0 %1220 }
  0xa6   : > { %1626 = vmatmul.mubr.msk.bf16.gmra.mrb[16].mxu1 %vm481_vm2, %v785_v30 }
  0xa7   : > { %1629 = vmatprep.mubr.msk.bf16.mxu1 %vm1757_vm1, %v1756_v1 }
  0xae   : > { %1630 = vmatmul.mubr.msk.bf16.gmra.mrb[20].mxu1 %vm481_vm2, %v787_v31 }
  0xaf   : > { %1633 = vmatprep.mubr.msk.bf16.mxu1 %vm1757_vm1, %v1756_v1 }
  0xb6   : > { %1634 = vmatmul.mubr.msk.bf16.gmra.mrb[24].mxu1 %vm481_vm2, %v789_v32 }
  0xb7   : > { %1637 = vmatprep.mubr.msk.bf16.mxu1 %vm1757_vm1, %v1756_v1 }
  0xbe   : > { %1638 = vmatmul.mubr.msk.bf16.gmra.mrb[28].mxu1 %vm481_vm2, %v791_v33 }
  0xbf   : > { %1641 = vmatprep.mubr.msk.bf16.mxu1 %vm1757_vm1, %v1756_v1 }
  0xc6   : > { %1642 = vmatmul.mubr.msk.bf16.gmra.mrb[32].mxu1 %vm481_vm2, %v793_v34 }
  0xc7   : > { %1665 = vmatprep.mubr.msk.bf16.mxu1 %vm481_vm2, %v1207_v35 }
  0xce   : > { %1666 = vmatmul.mubr.msk.bf16.vlgmr.msra.gmra.mrb[36].mxu1 %vm481_vm2, %v1209_v36 }
  0xcf   : > { %1669 = vmatprep.mubr.msk.bf16.mxu1 %vm481_vm2, %v1211_v37 }
  0xd6   : > { %1670 = vmatmul.mubr.msk.bf16.gmra.mrb[40].mxu1 %vm481_vm2, %v1213_v38 }
  0xd7   : > { %1673 = vmatprep.mubr.msk.bf16.mxu1 %vm481_vm2, %v1215_v39 }
  0xde   : > { %1674 = vmatmul.mubr.msk.bf16.gmra.mrb[44].mxu1 %vm481_vm2, %v1217_v40 }
  0xdf   : > { %1677 = vmatprep.mubr.msk.bf16.mxu1 %vm481_vm2, %v1219_v41 }
  0xe6   : > { %v1954_v45 = vpop.f32.mrb[0].mxu0  ;;  %1678 = vmatmul.mubr.msk.bf16.gmra.mrb[48].mxu1 %vm481_vm2, %v1221_v43 }
  0xe7   : > { %v618_v46 = vrot.slane %v1954_v45, 1  ;;  %v1573_v47 = vpop.f32.mrb[1].mxu0 }
  0xe8   : > { %v550_v48 = vpop.f32.mrb[2].mxu0 }
  0xe9   : > { %v627_v49 = vrot.slane %v550_v48, 1  ;;  %v1574_v50 = vpop.f32.mrb[3].mxu0 }
  0xeb   : > { %v639_v51 = vsel %vm638_vm3, %v618_v46, %v627_v49 }
  0xec   : > { %670 = vrot.lane.b32.xlu1 %v639_v51, %s1758_s15 }
  0xee   : > { %v1962_v52 = vpop.f32.mrb[4].mxu0 }
  0xef   : > { %v619_v53 = vrot.slane %v1962_v52, 1  ;;  %v1577_v54 = vpop.f32.mrb[5].mxu0 }
  0xf0   : > { %710 = vrot.lane.b32.xlu1 %v1962_v52, %s1759_s22  ;;  %v558_v55 = vpop.f32.mrb[6].mxu0 }
  0xf1   : > { %v628_v56 = vrot.slane %v558_v55, 1  ;;  %v1578_v57 = vpop.f32.mrb[7].mxu0 }
  0xf3   : > { %v640_v58 = vsel %vm638_vm3, %v619_v53, %v628_v56 }
  0xf4   : > { %743 = vrot.lane.b32.xlu1 %v640_v58, %s1760_s23  ;;  %672 = vrot.lane.b32.xlu0 %v640_v58, %s1758_s15 }
  0xf6   : > { %v1971_v59 = vpop.f32.mrb[8].mxu0 }
  0xf7   : > { %v620_v60 = vrot.slane %v1971_v59, 1  ;;  %v1581_v61 = vpop.f32.mrb[9].mxu0 }
  0xf8   : > { %712 = vrot.lane.b32.xlu0 %v1971_v59, %s1759_s22  ;;  %v566_v62 = vpop.f32.mrb[10].mxu0 }
  0xf9   : > { %v629_v63 = vrot.slane %v566_v62, 1  ;;  %v1582_v0 = vpop.f32.mrb[11].mxu0 }
  0xfb   : > { %v641_v1 = vsel %vm638_vm3, %v620_v60, %v629_v63 }
  0xfc   : > { %745 = vrot.lane.b32.xlu0 %v641_v1, %s1760_s23  ;;  %674 = vrot.lane.b32.xlu1 %v641_v1, %s1758_s15 }
  0xfe   : > { %v1980_v2 = vpop.f32.mrb[12].mxu0 }
  0xff   : > { %v621_v3 = vrot.slane %v1980_v2, 1  ;;  %v1585_v4 = vpop.f32.mrb[13].mxu0 }
 0x100   : > { %714 = vrot.lane.b32.xlu1 %v1980_v2, %s1759_s22  ;;  %v574_v5 = vpop.f32.mrb[14].mxu0 }
 0x101   : > { %v630_v6 = vrot.slane %v574_v5, 1  ;;  %v1586_v7 = vpop.f32.mrb[15].mxu0 }
 0x103   : > { %v642_v8 = vsel %vm638_vm3, %v621_v3, %v630_v6 }
 0x104   : > { %747 = vrot.lane.b32.xlu1 %v642_v8, %s1760_s23  ;;  %676 = vrot.lane.b32.xlu0 %v642_v8, %s1758_s15 }
 0x106   : > { %v1989_v9 = vpop.f32.mrb[16].mxu0 }
 0x107   : > { %v622_v10 = vrot.slane %v1989_v9, 1  ;;  %v1589_v11 = vpop.f32.mrb[17].mxu0 }
 0x108   : > { %716 = vrot.lane.b32.xlu0 %v1989_v9, %s1759_s22  ;;  %v582_v12 = vpop.f32.mrb[18].mxu0 }
 0x109   : > { %v631_v13 = vrot.slane %v582_v12, 1  ;;  %v1590_v14 = vpop.f32.mrb[19].mxu0 }
 0x10b   : > { %v643_v15 = vsel %vm638_vm3, %v622_v10, %v631_v13 }
 0x10c   : > { %749 = vrot.lane.b32.xlu0 %v643_v15, %s1760_s23  ;;  %678 = vrot.lane.b32.xlu1 %v643_v15, %s1758_s15 }
 0x10e   : > { %v1998_v16 = vpop.f32.mrb[20].mxu0 }
 0x10f   : > { %v623_v17 = vrot.slane %v1998_v16, 1  ;;  %v1593_v18 = vpop.f32.mrb[21].mxu0 }
 0x110   : > { %718 = vrot.lane.b32.xlu1 %v1998_v16, %s1759_s22  ;;  %v590_v19 = vpop.f32.mrb[22].mxu0 }
 0x111   : > { %v632_v20 = vrot.slane %v590_v19, 1  ;;  %v1594_v21 = vpop.f32.mrb[23].mxu0 }
 0x113   : > { %v644_v22 = vsel %vm638_vm3, %v623_v17, %v632_v20 }
 0x114   : > { %751 = vrot.lane.b32.xlu1 %v644_v22, %s1760_s23  ;;  %680 = vrot.lane.b32.xlu0 %v644_v22, %s1758_s15 }
 0x116   : > { %v2007_v23 = vpop.f32.mrb[24].mxu0 }
 0x117   : > { %v624_v24 = vrot.slane %v2007_v23, 1  ;;  %v1597_v25 = vpop.f32.mrb[25].mxu0 }
 0x118   : > { %720 = vrot.lane.b32.xlu0 %v2007_v23, %s1759_s22  ;;  %v598_v26 = vpop.f32.mrb[26].mxu0 }
 0x119   : > { %v633_v27 = vrot.slane %v598_v26, 1  ;;  %v1598_v28 = vpop.f32.mrb[27].mxu0 }
 0x11b   : > { %v645_v29 = vsel %vm638_vm3, %v624_v24, %v633_v27 }
 0x11c   : > { %753 = vrot.lane.b32.xlu0 %v645_v29, %s1760_s23  ;;  %682 = vrot.lane.b32.xlu1 %v645_v29, %s1758_s15 }
 0x11e   : > { %v2016_v30 = vpop.f32.mrb[28].mxu0 }
 0x11f   : > { %v625_v31 = vrot.slane %v2016_v30, 1  ;;  %v1601_v32 = vpop.f32.mrb[29].mxu0 }
 0x120   : > { %722 = vrot.lane.b32.xlu1 %v2016_v30, %s1759_s22  ;;  %v606_v33 = vpop.f32.mrb[30].mxu0 }
 0x121   : > { %v634_v34 = vrot.slane %v606_v33, 1  ;;  %v1602_v35 = vpop.f32.mrb[31].mxu0  ;;  %v2082_v33 = vld [vmem:[%s2181_s6] ss:$0 sm:$0xff] }
 0x122   : > { %v654_v35 = vadd.f32 %v2082_v33, %v1954_v45 }
 0x123   : > { %v646_v36 = vsel %vm638_vm3, %v625_v31, %v634_v34 }
 0x124   : > { %755 = vrot.lane.b32.xlu1 %v646_v36, %s1760_s23  ;;  %684 = vrot.lane.b32.xlu0 %v646_v36, %s1758_s15 }
 0x126   : > { %v611_v37 = vpop.f32.mrb[32].mxu0 }
 0x127   : > { %v626_v38 = vrot.slane %v611_v37, 1  ;;  %v1605_v39 = vpop.f32.mrb[33].mxu0 }
 0x128   : > { %724 = vrot.lane.b32.xlu0 %v611_v37, %s1759_s22  ;;  %v614_v40 = vpop.f32.mrb[34].mxu0 }
 0x129   : > { %v635_v41 = vrot.slane %v614_v40, 1  ;;  %v1606_v42 = vpop.f32.mrb[35].mxu0 }
 0x12b   : > { %v647_v43 = vsel %vm638_vm3, %v626_v38, %v635_v41 }
 0x12c   : > { %757 = vrot.lane.b32.xlu0 %v647_v43, %s1760_s23 }
 0x12e   : > { %v2029_v46 = vpop.f32.mrb[36].mxu0 }
 0x12f   : > { %v1134_v47 = vrot.slane %v2029_v46, 1  ;;  %v2032_v48 = vpop.f32.mrb[37].mxu0 }
 0x130   : > { %v1133_v49 = vrot.slane %v2032_v48, 1  ;;  %v1650_v50 = vpop.f32.mrb[38].mxu0 }
 0x131   : > { %v1142_v51 = vrot.slane %v1650_v50, 1  ;;  %v1073_v53 = vpop.f32.mrb[39].mxu0 }
 0x132   : > { %v1141_v54 = vrot.slane %v1073_v53, 1 }
 0x133   : > { %v1150_v55 = vsel %vm638_vm3, %v1134_v47, %v1142_v51 }
 0x134   : > { %v1149_v56 = vsel %vm638_vm3, %v1133_v49, %v1141_v54  ;;  %1175 = vrot.lane.b32.xlu0 %v1150_v55, %s1758_s15  ;;  %v655_v49 = vadd.f32 %v2082_v33, %v1962_v52 }
 0x135   : > { %1173 = vrot.lane.b32.xlu1 %v1149_v56, %s1758_s15 }
 0x136   : > { %v2041_v57 = vpop.f32.mrb[40].mxu0 }
 0x137   : > { %v1136_v58 = vrot.slane %v2041_v57, 1  ;;  %v2044_v60 = vpop.f32.mrb[41].mxu0 }
 0x138   : > { %v1135_v61 = vrot.slane %v2044_v60, 1  ;;  %v1654_v62 = vpop.f32.mrb[42].mxu0 }
 0x139   : > { %v1144_v63 = vrot.slane %v1654_v62, 1  ;;  %v1089_v0 = vpop.f32.mrb[43].mxu0 }
 0x13a   : > { %v1143_v1 = vrot.slane %v1089_v0, 1  ;;  %v656_v0 = vadd.f32 %v2082_v33, %v1971_v59 }
 0x13b   : > { %v1152_v3 = vsel %vm638_vm3, %v1136_v58, %v1144_v63 }
 0x13c   : > { %v1151_v4 = vsel %vm638_vm3, %v1135_v61, %v1143_v1  ;;  %1179 = vrot.lane.b32.xlu0 %v1152_v3, %s1758_s15 }
 0x13d   : > { %1177 = vrot.lane.b32.xlu1 %v1151_v4, %s1758_s15 }
 0x13e   : > { %v2053_v5 = vpop.f32.mrb[44].mxu0 }
 0x13f   : > { %v1138_v6 = vrot.slane %v2053_v5, 1  ;;  %v2056_v7 = vpop.f32.mrb[45].mxu0 }
 0x140   : > { %v1137_v8 = vrot.slane %v2056_v7, 1  ;;  %v1658_v10 = vpop.f32.mrb[46].mxu0 }
 0x141   : > { %v1146_v11 = vrot.slane %v1658_v10, 1  ;;  %v1105_v12 = vpop.f32.mrb[47].mxu0 }
 0x142   : > { %v1145_v13 = vrot.slane %v1105_v12, 1 }
 0x143   : > { %v1154_v14 = vsel %vm638_vm3, %v1138_v6, %v1146_v11 }
 0x144   : > { %v1153_v15 = vsel %vm638_vm3, %v1137_v8, %v1145_v13  ;;  %1183 = vrot.lane.b32.xlu0 %v1154_v14, %s1758_s15 }
 0x145   : > { %1181 = vrot.lane.b32.xlu1 %v1153_v15, %s1758_s15  ;;  %v657_v15 = vadd.f32 %v2082_v33, %v1980_v2 }
 0x146   : > { %v2065_v17 = vpop.f32.mrb[48].mxu0 }
 0x147   : > { %v1140_v18 = vrot.slane %v2065_v17, 1  ;;  %v2068_v19 = vpop.f32.mrb[49].mxu0 }
 0x148   : > { %v1139_v20 = vrot.slane %v2068_v19, 1  ;;  %v1662_v21 = vpop.f32.mrb[50].mxu0 }
 0x149   : > { %v1148_v22 = vrot.slane %v1662_v21, 1  ;;  %v1121_v24 = vpop.f32.mrb[51].mxu0 }
 0x14a   : > { %v1147_v25 = vrot.slane %v1121_v24, 1 }
 0x14b   : > { %v2073_v26 = vsel %vm638_vm3, %v1140_v18, %v1148_v22 }
 0x14c   : > { %v2077_v27 = vsel %vm638_vm3, %v1139_v20, %v1147_v25 }
 0x159   : > { %v858_v28 = vpop.f32.mrb[0].mxu1 }
 0x15a   : > { %v1611_v29 = vpop.f32.mrb[1].mxu1 }
 0x15b   : > { %v861_v31 = vpop.f32.mrb[2].mxu1 }
 0x15c   : > { %v1612_v32 = vpop.f32.mrb[3].mxu1 }
 0x15e   : > { %v671_v34 = vpop.permute.xlu1 %670 }
 0x15f   : > { %v694_v44 = vadd.f32 %v671_v34, %v654_v35  ;;  %v658_v34 = vadd.f32 %v2082_v33, %v1989_v9 }
 0x161   : > { %v865_v36 = vpop.f32.mrb[4].mxu1 }
 0x162   : > { %v1615_v37 = vpop.f32.mrb[5].mxu1  ;;  %v711_v38 = vpop.permute.xlu1 %710  ;;  %936 = vrot.lane.b32.xlu1 %v865_v36, %s1758_s15 }
 0x163   : > { %v868_v39 = vpop.f32.mrb[6].mxu1  ;;  %v734_v41 = vadd.f32 %v711_v38, %v694_v44 }
 0x164   : > { %v1616_v40 = vpop.f32.mrb[7].mxu1 }
 0x166   : > { %v744_v42 = vpop.permute.xlu1 %743  ;;  %v673_v43 = vpop.permute.xlu0 %672 }
 0x167   : > { %v767_v47 = vadd.f32 %v744_v42, %v734_v41  ;;  %v695_v54 = vadd.f32 %v673_v43, %v655_v49 }
 0x169   : > { %v872_v50 = vpop.f32.mrb[8].mxu1  ;;  %v2089_v51 = vadd.f32 %v858_v28, %v767_v47  ;;  %v659_v47 = vadd.f32 %v2082_v33, %v1998_v16 }
 0x16a   : > { %v1619_v53 = vpop.f32.mrb[9].mxu1  ;;  %v713_v45 = vpop.permute.xlu0 %712  ;;  %938 = vrot.lane.b32.xlu0 %v872_v50, %s1758_s15 }
 0x16b   : > { %v875_v55 = vpop.f32.mrb[10].mxu1  ;;  %v735_v58 = vadd.f32 %v713_v45, %v695_v54 }
 0x16c   : > { %v1620_v56 = vpop.f32.mrb[11].mxu1 }
 0x16e   : > { %v746_v61 = vpop.permute.xlu0 %745  ;;  %v675_v62 = vpop.permute.xlu1 %674 }
 0x16f   : > { %v768_v63 = vadd.f32 %v746_v61, %v735_v58  ;;  %v696_v6 = vadd.f32 %v675_v62, %v656_v0  ;;  %v660_v58 = vadd.f32 %v2082_v33, %v2007_v23 }
 0x171   : > { %v879_v1 = vpop.f32.mrb[12].mxu1  ;;  %v2094_v3 = vadd.f32 %v865_v36, %v768_v63 }
 0x172   : > { %v1623_v52 = vpop.f32.mrb[13].mxu1  ;;  %v715_v4 = vpop.permute.xlu1 %714  ;;  %940 = vrot.lane.b32.xlu1 %v879_v1, %s1758_s15 }
 0x173   : > { %v882_v8 = vpop.f32.mrb[14].mxu1  ;;  %v736_v11 = vadd.f32 %v715_v4, %v696_v6 }
 0x174   : > { %v1624_v10 = vpop.f32.mrb[15].mxu1 }
 0x176   : > { %v748_v12 = vpop.permute.xlu1 %747  ;;  %v677_v13 = vpop.permute.xlu0 %676 }
 0x177   : > { %v769_v14 = vadd.f32 %v748_v12, %v736_v11  ;;  %v697_v22 = vadd.f32 %v677_v13, %v657_v15  ;;  %v661_v11 = vadd.f32 %v2082_v33, %v2016_v30 }
 0x179   : > { %v886_v18 = vpop.f32.mrb[16].mxu1  ;;  %v2099_v20 = vadd.f32 %v872_v50, %v769_v14 }
 0x17a   : > { %v1627_v59 = vpop.f32.mrb[17].mxu1  ;;  %v717_v21 = vpop.permute.xlu0 %716  ;;  %942 = vrot.lane.b32.xlu0 %v886_v18, %s1758_s15 }
 0x17b   : > { %v889_v24 = vpop.f32.mrb[18].mxu1  ;;  %v737_v28 = vadd.f32 %v717_v21, %v697_v22 }
 0x17c   : > { %v1628_v25 = vpop.f32.mrb[19].mxu1 }
 0x17e   : > { %v750_v29 = vpop.permute.xlu0 %749  ;;  %v679_v31 = vpop.permute.xlu1 %678 }
 0x17f   : > { %v770_v32 = vadd.f32 %v750_v29, %v737_v28  ;;  %v698_v38 = vadd.f32 %v679_v31, %v658_v34 }
 0x181   : > { %v893_v35 = vpop.f32.mrb[20].mxu1  ;;  %v2104_v36 = vadd.f32 %v879_v1, %v770_v32 }
 0x182   : > { %v1631_v2 = vpop.f32.mrb[21].mxu1  ;;  %v719_v37 = vpop.permute.xlu1 %718  ;;  %944 = vrot.lane.b32.xlu1 %v893_v35, %s1758_s15 }
 0x183   : > { %v896_v44 = vpop.f32.mrb[22].mxu1  ;;  %v738_v40 = vadd.f32 %v719_v37, %v698_v38 }
 0x184   : > { %v1632_v39 = vpop.f32.mrb[23].mxu1 }
 0x186   : > { %v752_v41 = vpop.permute.xlu1 %751  ;;  %v681_v42 = vpop.permute.xlu0 %680 }
 0x187   : > { %v771_v43 = vadd.f32 %v752_v41, %v738_v40  ;;  %v699_v45 = vadd.f32 %v681_v42, %v659_v47 }
 0x189   : > { %v900_v49 = vpop.f32.mrb[24].mxu1  ;;  %v2109_v50 = vadd.f32 %v886_v18, %v771_v43 }
 0x18a   : > { %v1635_v9 = vpop.f32.mrb[25].mxu1  ;;  %v721_v53 = vpop.permute.xlu0 %720  ;;  %946 = vrot.lane.b32.xlu0 %v900_v49, %s1758_s15 }
 0x18b   : > { %v903_v54 = vpop.f32.mrb[26].mxu1  ;;  %v739_v56 = vadd.f32 %v721_v53, %v699_v45 }
 0x18c   : > { %v1636_v55 = vpop.f32.mrb[27].mxu1 }
 0x18e   : > { %v754_v61 = vpop.permute.xlu0 %753  ;;  %v683_v62 = vpop.permute.xlu1 %682 }
 0x18f   : > { %v772_v63 = vadd.f32 %v754_v61, %v739_v56  ;;  %v700_v0 = vadd.f32 %v683_v62, %v660_v58 }
 0x191   : > { %v907_v1 = vpop.f32.mrb[28].mxu1  ;;  %v2114_v16 = vadd.f32 %v893_v35, %v772_v63 }
 0x192   : > { %v1639_v52 = vpop.f32.mrb[29].mxu1  ;;  %v723_v4 = vpop.permute.xlu1 %722  ;;  %948 = vrot.lane.b32.xlu1 %v907_v1, %s1758_s15 }
 0x193   : > { %v910_v6 = vpop.f32.mrb[30].mxu1  ;;  %v740_v10 = vadd.f32 %v723_v4, %v700_v0 }
 0x194   : > { %v1640_v8 = vpop.f32.mrb[31].mxu1 }
 0x196   : > { %v756_v12 = vpop.permute.xlu1 %755  ;;  %v685_v13 = vpop.permute.xlu0 %684  ;;  %1185 = vrot.lane.b32.xlu1 %v2077_v27, %s1758_s15 }
 0x197   : > { %v773_v23 = vadd.f32 %v756_v12, %v740_v10  ;;  %v701_v14 = vadd.f32 %v685_v13, %v661_v11 }
 0x199   : > { %v914_v15 = vpop.f32.mrb[32].mxu1  ;;  %v2121_v18 = vadd.f32 %v900_v49, %v773_v23 }
 0x19a   : > { %v1643_v59 = vpop.f32.mrb[33].mxu1  ;;  %v725_v21 = vpop.permute.xlu0 %724  ;;  %950 = vrot.lane.b32.xlu0 %v914_v15, %s1758_s15 }
 0x19b   : > { %v917_v22 = vpop.f32.mrb[34].mxu1  ;;  %v741_v25 = vadd.f32 %v725_v21, %v701_v14 }
 0x19c   : > { %v1644_v24 = vpop.f32.mrb[35].mxu1 }
 0x19e   : > { %v758_v28 = vpop.permute.xlu0 %757  ;;  %1187 = vrot.lane.b32.xlu0 %v2073_v26, %s1758_s15 }
 0x19f   : > { %v774_v30 = vadd.f32 %v758_v28, %v741_v25 }
 0x1a1   : > { %v1667_v33 = vpop.f32.mrb[36].mxu1  ;;  %v2126_v29 = vadd.f32 %v907_v1, %v774_v30 }
 0x1a2   : > { %v1283_v27 = vpop.f32.mrb[37].mxu1 }
 0x1a3   : > { %v1668_v31 = vpop.f32.mrb[38].mxu1 }
 0x1a4   : > { %v1286_v32 = vpop.f32.mrb[39].mxu1 }
 0x1a6   : > { %v1176_v9 = vpop.permute.xlu0 %1175 }
 0x1a7   : > { %v1174_v47 = vpop.permute.xlu1 %1173 }
 0x1a9   : > { %v1671_v34 = vpop.f32.mrb[40].mxu1 }
 0x1aa   : > { %v1297_v35 = vpop.f32.mrb[41].mxu1 }
 0x1ab   : > { %v1672_v2 = vpop.f32.mrb[42].mxu1 }
 0x1ac   : > { %v1300_v37 = vpop.f32.mrb[43].mxu1 }
 0x1ae   : > { %v1180_v45 = vpop.permute.xlu0 %1179 }
 0x1af   : > { %v1178_v49 = vpop.permute.xlu1 %1177 }
 0x1b1   : > { %v1675_v38 = vpop.f32.mrb[44].mxu1 }
 0x1b2   : > { %v1311_v44 = vpop.f32.mrb[45].mxu1 }
 0x1b3   : > { %v1676_v39 = vpop.f32.mrb[46].mxu1 }
 0x1b4   : > { %v1314_v40 = vpop.f32.mrb[47].mxu1 }
 0x1b6   : > { %v1184_v56 = vpop.permute.xlu0 %1183 }
 0x1b7   : > { %v1182_v53 = vpop.permute.xlu1 %1181 }
 0x1b9   : > { %v1679_v41 = vpop.f32.mrb[48].mxu1 }
 0x1ba   : > { %v1325_v42 = vpop.f32.mrb[49].mxu1 }
 0x1bb   : > { %v1680_v43 = vpop.f32.mrb[50].mxu1 }
 0x1bc   : > { %v1328_v26 = vpop.f32.mrb[51].mxu1 }
 0x1d4   : > { %v937_v54 = vpop.permute.xlu1 %936 }
 0x1d5   : > { %v960_v55 = vadd.f32 %v937_v54, %v2089_v51 }
 0x1d7   : > { %v1157_v58 = vadd.f32 %v2032_v48, %v960_v55 }
 0x1d9   : > { %v1197_v61 = vadd.f32 %v1174_v47, %v1157_v58 }
 0x1db   : > { %v1338_v62 = vadd.f32 %v1283_v27, %v1197_v61 }
 0x1dc   : > { %v939_v63 = vpop.permute.xlu0 %938 }
 0x1dd   : > { %1346 = vst.msk [vmem:[%s2134_s10] sm:$0xff] %vm481_vm2, %v1338_v62  ;;  %v961_v0 = vadd.f32 %v939_v63, %v2094_v3 }
 0x1df   : > { %v1158_v51 = vadd.f32 %v2029_v46, %v961_v0 }
 0x1e1   : > { %v1198_v48 = vadd.f32 %v1176_v9, %v1158_v51 }
 0x1e3   : > { %v1339_v1 = vadd.f32 %v1667_v33, %v1198_v48 }
 0x1e4   : > { %v941_v52 = vpop.permute.xlu1 %940 }
 0x1e5   : > { %1347 = vst.msk [vmem:[%s2134_s10 + $0x8] sm:$0xff] %vm481_vm2, %v1339_v1  ;;  %v962_v4 = vadd.f32 %v941_v52, %v2099_v20 }
 0x1e7   : > { %v1159_v6 = vadd.f32 %v2044_v60, %v962_v4 }
 0x1e9   : > { %v1199_v8 = vadd.f32 %v1178_v49, %v1159_v6 }
 0x1eb   : > { %v1340_v10 = vadd.f32 %v1297_v35, %v1199_v8 }
 0x1ec   : > { %v943_v11 = vpop.permute.xlu0 %942 }
 0x1ed   : > { %1348 = vst.msk [vmem:[%s2134_s10 + $0x10] sm:$0xff] %vm481_vm2, %v1340_v10  ;;  %v963_v3 = vadd.f32 %v943_v11, %v2104_v36 }
 0x1ef   : > { %v1160_v46 = vadd.f32 %v2041_v57, %v963_v3 }
 0x1f1   : > { %v1200_v12 = vadd.f32 %v1180_v45, %v1160_v46 }
 0x1f3   : > { %v1341_v13 = vadd.f32 %v1671_v34, %v1200_v12 }
 0x1f4   : > { %v945_v23 = vpop.permute.xlu1 %944 }
 0x1f5   : > { %1349 = vst.msk [vmem:[%s2134_s10 + $0x18] sm:$0xff] %vm481_vm2, %v1341_v13  ;;  %v964_v20 = vadd.f32 %v945_v23, %v2109_v50 }
 0x1f7   : > { %v1161_v60 = vadd.f32 %v2056_v7, %v964_v20 }
 0x1f9   : > { %v1201_v14 = vadd.f32 %v1182_v53, %v1161_v60 }
 0x1fb   : > { %v1342_v15 = vadd.f32 %v1311_v44, %v1201_v14 }
 0x1fc   : > { %v947_v59 = vpop.permute.xlu0 %946 }
 0x1fd   : > { %1350 = vst.msk [vmem:[%s2134_s10 + $0x20] sm:$0xff] %vm481_vm2, %v1342_v15  ;;  %v965_v36 = vadd.f32 %v947_v59, %v2114_v16 }
 0x1ff   : > { %v1162_v57 = vadd.f32 %v2053_v5, %v965_v36 }
 0x201   : > { %v1202_v21 = vadd.f32 %v1184_v56, %v1162_v57 }
 0x203   : > { %v1343_v22 = vadd.f32 %v1675_v38, %v1202_v21 }
 0x204   : > { %v949_v24 = vpop.permute.xlu1 %948 }
 0x205   : > { %1351 = vst.msk [vmem:[%s2134_s10 + $0x28] sm:$0xff] %vm481_vm2, %v1343_v22  ;;  %v966_v50 = vadd.f32 %v949_v24, %v2121_v18 }
 0x207   : > { %v1163_v7 = vadd.f32 %v2068_v19, %v966_v50 }
 0x208   : > { %v1186_v25 = vpop.permute.xlu1 %1185 }
 0x209   : > { %v1203_v28 = vadd.f32 %v1186_v25, %v1163_v7 }
 0x20b   : > { %v1344_v30 = vadd.f32 %v1325_v42, %v1203_v28 }
 0x20c   : > { %v951_v33 = vpop.permute.xlu0 %950 }
 0x20d   : > { %1352 = vst.msk [vmem:[%s2134_s10 + $0x30] sm:$0xff] %vm481_vm2, %v1344_v30  ;;  %v967_v16 = vadd.f32 %v951_v33, %v2126_v29 }
 0x20f   : > { %v1164_v5 = vadd.f32 %v2065_v17, %v967_v16 }
 0x210   : > { %v1188_v27 = vpop.permute.xlu0 %1187 }
 0x211   : > { %v1204_v31 = vadd.f32 %v1188_v27, %v1164_v5 }
 0x213   : > { %v1345_v32 = vadd.f32 %v1679_v41, %v1204_v31 }
 0x215   : > { %1353 = vst.msk [vmem:[%s2134_s10 + $0x38] sm:$0xff] %vm481_vm2, %v1345_v32 }
 0x216 PF: > { %s17_s26 = sadd.s32 1, %s1754_s26   ;;  %s2183_s24 = smov %s1750_s25 }
 0x217   : > { %p14_p5 = scmp.ge.s32.totalorder %s17_s26, 4   ;;  %s2184_s25 = smov %s2186_s27 }
 0x219   :  { %16 = sbr.rel (!%p14_p5) target bundleno = 2 (0x2), region = 81 }

// kernel: tpu_custom_call.1
= control target key start
LH: loop header
LB: loop body
LE: loop exit
PB: predicated region body
PF: predicated region fallthrough
CT: control target
= control target key end

     0   :  { %s1801_s24 = smov 0   ;;  %s1803_s25 = smov 0   ;;  %s2175_s0 = inlined_call_operand.vmem [shape: bf16[2,9,2,16,8], index: 0, kind: input, shape index: {}]   ;;  %s2176_s1 = inlined_call_operand.vmem [shape: bf16[2,9,2,16,8], index: 1, kind: input, shape index: {}]   ;;  %s2177_s2 = inlined_call_operand.vmem [shape: bf16[4,16], index: 2, kind: input, shape index: {}]   ;;  %s2178_s3 = inlined_call_operand.vmem [shape: bf16[4,8], index: 3, kind: input, shape index: {}]   ;;  %s2179_s4 = inlined_call_operand.vmem [shape: bf16[4,8], index: 4, kind: input, shape index: {}]   ;;  %s2180_s5 = inlined_call_operand.vmem [shape: bf16[4,4], index: 5, kind: input, shape index: {}]   ;;  %s2181_s6 = inlined_call_operand.vmem [shape: f32[1,4], index: 6, kind: input, shape index: {}]   ;;  %s2182_s7 = inlined_call_operand.vmem [shape: f32[2,8,8,4], index: 7, kind: output, shape index: {}]  }
   0x1   :  { %s1805_s26 = smov 0  }
   0x2 LB: > { %s29_s27 = sadd.s32 1, %s1750_s25  ;;  %p1469_p0 = scmp.ge.s32.totalorder %s1754_s26, 1  ;;  %s1754_s26 = sphi %s1805_s26, %s17_s26   ;;  %s1750_s25 = sphi %s1803_s25, %s2184_s25   ;;  %s1746_s24 = sphi %s1801_s24, %s2183_s24  }
   0x3   : > { %p31_p1 = scmp.ge.s32.totalorder %s29_s27, 2  ;;  %p295_p2 = scmp.lt.s32.totalorder %s1754_s26, 3 }
   0x5   : > { %s2186_s27 = smov (%p31_p1, %s29_s27), 0  ;;  %p296_p3 = pnand %p1469_p0, %p295_p2 }
   0x6   : > { %v435_v0 = vld [vmem:[%s2177_s2] sm:$0x3] (!%p296_p3)  ;;  %vm509_vm0 = vcmask (!%p296_p3), 1041408   ;;  %p360_p4 = scmp.lt.s32.totalorder (!%p296_p3), %s1746_s24, 1  ;;  %v1756_v1 = vmov (!%p296_p3), 0.0   ;;  %vm1757_vm1 = vmmov (!%p296_p3), 0   ;;  %v636_v42 = vlaneseq (!%p296_p3) }
   0x7   : > { %299 = sbr.rel (%p296_p3) target bundleno = 534 (0x216), region = 48  ;;  %1569 = vmatprep.subr.bf16.mxu0 (!%p296_p3), %v1756_v1  ;;  %v511_v2 = vsel (!%p296_p3), %vm509_vm0, %v435_v0, 0  ;;  %1571 = vmatprep.mubr.msk.bf16.mxu0 (!%p296_p3), %vm1757_vm1, %v1756_v1  ;;  %v968_v3 = vld [vmem:[%s2179_s4] sm:$0x3] (!%p296_p3)  ;;  %vm481_vm2 = vcmask (!%p296_p3), 31744   ;;  %s1758_s15 = smov (!%p296_p3), 124  }
   0x8   : > { %1570 = vmatpush3.bf16.msra.mxu0 (!%p296_p3), %v511_v2  ;;  %1607 = vmatprep.subr.bf16.mxu1 (!%p296_p3), %v1756_v1  ;;  %v775_v4 = vld [vmem:[%s2178_s3] sm:$0x3] (!%p296_p3)  ;;  %v1034_v7 = vsel (!%p296_p3), %vm509_vm0, %v968_v3, 0  ;;  %v1952_v44 = vshrl.u32 (!%p296_p3), %v636_v42, 7  ;;  %s1759_s22 = smov (!%p296_p3), 120   ;;  %s1760_s23 = smov (!%p296_p3), 116  }
   0x9   : > { %1681 = vmatprep.subr.msk.bf16.mxu0 (!%p296_p3), %vm509_vm0, %v968_v3  ;;  %v822_v5 = vsel (!%p296_p3), %vm509_vm0, %v775_v4, 0  ;;  %1609 = vmatprep.mubr.msk.bf16.mxu1 (!%p296_p3), %vm1757_vm1, %v1756_v1  ;;  %v1205_v24 = vld [vmem:[%s2180_s5] sm:$0x3] (!%p296_p3) }
   0xa   : > { %1608 = vmatpush3.bf16.msra.mxu1 (!%p296_p3), %v822_v5  ;;  %v1247_v25 = vsel (!%p296_p3), %vm509_vm0, %v1205_v24, 0  ;;  %vm638_vm3 = vcmp.lt.s32.totalorder (!%p296_p3), %v1952_v44, 7 }
   0xb   : > { %1682 = vmatprep.subr.msk.bf16.mxu1 (!%p296_p3), %vm509_vm0, %v1205_v24 }
   0xe   : > { %s2188_s24 = smov (!%p360_p4, %s1746_s24), 1 }
   0xf   : > { %s1683_s11 = smul.u32 144, %s2188_s24  ;;  %s1530_s30 = sshll.u32 %s2188_s24, 6 }
  0x10   : > { %s2134_s10 = scalar_lea.vmem %s2182_s7, %s1530_s30 }
  0x11   : > { %s1843_s14 = scalar_lea.vmem %s2175_s0, %s1683_s11  ;;  %s1529_s16 = sadd.s32 128, %s1683_s11 }
  0x12   : > { %v1715_v6 = vld [vmem:[%s1843_s14] sm:$0xff]   ;;  %v1716_v8 = vld [vmem:[%s1843_s14 + $0x10] sm:$0xff]   ;;  %s386_s19 = scalar_lea.vmem %s2176_s1, %s1529_s16  ;;  %v1724_v16 = vld [vmem:[%s1843_s14 + $0x8] sm:$0xff]  }
  0x13   : > { %776 = vrot.lane.b32.xlu0 %v1715_v6, %s1758_s15  ;;  %1572 = vmatmul.mubr.msk.bf16.vlgmr.msra.gmra.mrb[0].mxu0 %vm481_vm2, %v1715_v6  ;;  %v1717_v9 = vld [vmem:[%s1843_s14 + $0x20] sm:$0xff]   ;;  %v1718_v10 = vld [vmem:[%s1843_s14 + $0x30] sm:$0xff]   ;;  %v1725_v17 = vld [vmem:[%s1843_s14 + $0x18] sm:$0xff]  }
  0x14   : > { %1575 = vmatprep.mubr.msk.bf16.mxu0 %vm1757_vm1, %v1756_v1  ;;  %1646 = vmatpush3.bf16.msra.mxu0 %v1034_v7  ;;  %v1719_v11 = vld [vmem:[%s1843_s14 + $0x40] sm:$0xff]   ;;  %v1720_v12 = vld [vmem:[%s1843_s14 + $0x50] sm:$0xff]   ;;  %v1726_v18 = vld [vmem:[%s1843_s14 + $0x28] sm:$0xff]  }
  0x15   : > { %780 = vrot.lane.b32.xlu1 %v1717_v9, %s1758_s15  ;;  %v1721_v13 = vld [vmem:[%s1843_s14 + $0x60] sm:$0xff]   ;;  %v1722_v14 = vld [vmem:[%s1843_s14 + $0x70] sm:$0xff]   ;;  %v1727_v19 = vld [vmem:[%s1843_s14 + $0x38] sm:$0xff]  }
  0x16   : > { %v1723_v15 = vld [vmem:[%s386_s19] sm:$0xff]   ;;  %v1728_v20 = vld [vmem:[%s1843_s14 + $0x48] sm:$0xff]   ;;  %v1729_v21 = vld [vmem:[%s1843_s14 + $0x58] sm:$0xff]  }
  0x17   : > { %778 = vrot.lane.b32.xlu0 %v1716_v8, %s1758_s15  ;;  %v1730_v22 = vld [vmem:[%s1843_s14 + $0x68] sm:$0xff]   ;;  %v1731_v23 = vld [vmem:[%s1843_s14 + $0x78] sm:$0xff]  }
  0x19   : > { %782 = vrot.lane.b32.xlu1 %v1718_v10, %s1758_s15 }
  0x1b   : > { %1576 = vmatmul.mubr.msk.bf16.gmra.mrb[4].mxu0 %vm481_vm2, %v1716_v8  ;;  %784 = vrot.lane.b32.xlu0 %v1719_v11, %s1758_s15 }
  0x1c   : > { %1579 = vmatprep.mubr.msk.bf16.mxu0 %vm1757_vm1, %v1756_v1 }
  0x1d   : > { %786 = vrot.lane.b32.xlu1 %v1720_v12, %s1758_s15 }
  0x1f   : > { %788 = vrot.lane.b32.xlu0 %v1721_v13, %s1758_s15 }
  0x21   : > { %790 = vrot.lane.b32.xlu1 %v1722_v14, %s1758_s15 }
  0x23   : > { %1580 = vmatmul.mubr.msk.bf16.gmra.mrb[8].mxu0 %vm481_vm2, %v1717_v9  ;;  %792 = vrot.lane.b32.xlu0 %v1723_v15, %s1758_s15 }
  0x24   : > { %1583 = vmatprep.mubr.msk.bf16.mxu0 %vm1757_vm1, %v1756_v1 }
  0x25   : > { %1206 = vrot.lane.b32.xlu1 %v1724_v16, %s1758_s15 }
  0x27   : > { %1208 = vrot.lane.b32.xlu0 %v1725_v17, %s1758_s15 }
  0x29   : > { %1210 = vrot.lane.b32.xlu1 %v1726_v18, %s1758_s15 }
  0x2b   : > { %1584 = vmatmul.mubr.msk.bf16.gmra.mrb[12].mxu0 %vm481_vm2, %v1718_v10  ;;  %1212 = vrot.lane.b32.xlu0 %v1727_v19, %s1758_s15 }
  0x2c   : > { %1587 = vmatprep.mubr.msk.bf16.mxu0 %vm1757_vm1, %v1756_v1 }
  0x2d   : > { %1214 = vrot.lane.b32.xlu1 %v1728_v20, %s1758_s15 }
  0x2f   : > { %1216 = vrot.lane.b32.xlu0 %v1729_v21, %s1758_s15 }
  0x31   : > { %1218 = vrot.lane.b32.xlu1 %v1730_v22, %s1758_s15 }
  0x33   : > { %1588 = vmatmul.mubr.msk.bf16.gmra.mrb[16].mxu0 %vm481_vm2, %v1719_v11  ;;  %1220 = vrot.lane.b32.xlu0 %v1731_v23, %s1758_s15 }
  0x34   : > { %1591 = vmatprep.mubr.msk.bf16.mxu0 %vm1757_vm1, %v1756_v1 }
  0x3b   : > { %1592 = vmatmul.mubr.msk.bf16.gmra.mrb[20].mxu0 %vm481_vm2, %v1720_v12 }
  0x3c   : > { %1595 = vmatprep.mubr.msk.bf16.mxu0 %vm1757_vm1, %v1756_v1 }
  0x43   : > { %1596 = vmatmul.mubr.msk.bf16.gmra.mrb[24].mxu0 %vm481_vm2, %v1721_v13 }
  0x44   : > { %1599 = vmatprep.mubr.msk.bf16.mxu0 %vm1757_vm1, %v1756_v1 }
  0x4b   : > { %1600 = vmatmul.mubr.msk.bf16.gmra.mrb[28].mxu0 %vm481_vm2, %v1722_v14 }
  0x4c   : > { %1603 = vmatprep.mubr.msk.bf16.mxu0 %vm1757_vm1, %v1756_v1 }
  0x53   : > { %1604 = vmatmul.mubr.msk.bf16.gmra.mrb[32].mxu0 %vm481_vm2, %v1723_v15 }
  0x54   : > { %1647 = vmatprep.mubr.msk.bf16.mxu0 %vm481_vm2, %v1724_v16 }
  0x5b   : > { %1648 = vmatmul.mubr.msk.bf16.vlgmr.msra.gmra.mrb[36].mxu0 %vm481_vm2, %v1725_v17 }
  0x5c   : > { %1651 = vmatprep.mubr.msk.bf16.mxu0 %vm481_vm2, %v1726_v18 }
  0x63   : > { %1652 = vmatmul.mubr.msk.bf16.gmra.mrb[40].mxu0 %vm481_vm2, %v1727_v19 }
  0x64   : > { %1655 = vmatprep.mubr.msk.bf16.mxu0 %vm481_vm2, %v1728_v20 }
  0x6b   : > { %1656 = vmatmul.mubr.msk.bf16.gmra.mrb[44].mxu0 %vm481_vm2, %v1729_v21 }
  0x6c   : > { %1659 = vmatprep.mubr.msk.bf16.mxu0 %vm481_vm2, %v1730_v22 }
  0x73   : > { %1660 = vmatmul.mubr.msk.bf16.gmra.mrb[48].mxu0 %vm481_vm2, %v1731_v23 }
  0x85   : > { %v777_v26 = vpop.permute.xlu0 %776 }
  0x86   : > { %1610 = vmatmul.mubr.msk.bf16.vlgmr.msra.gmra.mrb[0].mxu1 %vm481_vm2, %v777_v26 }
  0x87   : > { %1613 = vmatprep.mubr.msk.bf16.mxu1 %vm1757_vm1, %v1756_v1  ;;  %1664 = vmatpush3.bf16.msra.mxu1 %v1247_v25  ;;  %v781_v28 = vpop.permute.xlu1 %780 }
  0x89   : > { %v779_v27 = vpop.permute.xlu0 %778 }
  0x8b   : > { %v783_v29 = vpop.permute.xlu1 %782 }
  0x8d   : > { %v785_v30 = vpop.permute.xlu0 %784 }
  0x8e   : > { %1614 = vmatmul.mubr.msk.bf16.gmra.mrb[4].mxu1 %vm481_vm2, %v779_v27 }
  0x8f   : > { %1617 = vmatprep.mubr.msk.bf16.mxu1 %vm1757_vm1, %v1756_v1  ;;  %v787_v31 = vpop.permute.xlu1 %786 }
  0x91   : > { %v789_v32 = vpop.permute.xlu0 %788 }
  0x93   : > { %v791_v33 = vpop.permute.xlu1 %790 }
  0x95   : > { %v793_v34 = vpop.permute.xlu0 %792 }
  0x96   : > { %1618 = vmatmul.mubr.msk.bf16.gmra.mrb[8].mxu1 %vm481_vm2, %v781_v28 }
  0x97   : > { %1621 = vmatprep.mubr.msk.bf16.mxu1 %vm1757_vm1, %v1756_v1  ;;  %v1207_v35 = vpop.permute.xlu1 %1206 }
  0x99   : > { %v1209_v36 = vpop.permute.xlu0 %1208 }
  0x9b   : > { %v1211_v37 = vpop.permute.xlu1 %1210 }
  0x9d   : > { %v1213_v38 = vpop.permute.xlu0 %1212 }
  0x9e   : > { %1622 = vmatmul.mubr.msk.bf16.gmra.mrb[12].mxu1 %vm481_vm2, %v783_v29 }
  0x9f   : > { %1625 = vmatprep.mubr.msk.bf16.mxu1 %vm1757_vm1, %v1756_v1  ;;  %v1215_v39 = vpop.permute.xlu1 %1214 }
  0xa1   : > { %v1217_v40 = vpop.permute.xlu0 %1216 }
  0xa3   : > { %v1219_v41 = vpop.permute.xlu1 %1218 }
  0xa5   : > { %v1221_v43 = vpop.permute.xlu0 %1220 }
  0xa6   : > { %1626 = vmatmul.mubr.msk.bf16.gmra.mrb[16].mxu1 %vm481_vm2, %v785_v30 }
  0xa7   : > { %1629 = vmatprep.mubr.msk.bf16.mxu1 %vm1757_vm1, %v1756_v1 }
  0xae   : > { %1630 = vmatmul.mubr.msk.bf16.gmra.mrb[20].mxu1 %vm481_vm2, %v787_v31 }
  0xaf   : > { %1633 = vmatprep.mubr.msk.bf16.mxu1 %vm1757_vm1, %v1756_v1 }
  0xb6   : > { %1634 = vmatmul.mubr.msk.bf16.gmra.mrb[24].mxu1 %vm481_vm2, %v789_v32 }
  0xb7   : > { %1637 = vmatprep.mubr.msk.bf16.mxu1 %vm1757_vm1, %v1756_v1 }
  0xbe   : > { %1638 = vmatmul.mubr.msk.bf16.gmra.mrb[28].mxu1 %vm481_vm2, %v791_v33 }
  0xbf   : > { %1641 = vmatprep.mubr.msk.bf16.mxu1 %vm1757_vm1, %v1756_v1 }
  0xc6   : > { %1642 = vmatmul.mubr.msk.bf16.gmra.mrb[32].mxu1 %vm481_vm2, %v793_v34 }
  0xc7   : > { %1665 = vmatprep.mubr.msk.bf16.mxu1 %vm481_vm2, %v1207_v35 }
  0xce   : > { %1666 = vmatmul.mubr.msk.bf16.vlgmr.msra.gmra.mrb[36].mxu1 %vm481_vm2, %v1209_v36 }
  0xcf   : > { %1669 = vmatprep.mubr.msk.bf16.mxu1 %vm481_vm2, %v1211_v37 }
  0xd6   : > { %1670 = vmatmul.mubr.msk.bf16.gmra.mrb[40].mxu1 %vm481_vm2, %v1213_v38 }
  0xd7   : > { %1673 = vmatprep.mubr.msk.bf16.mxu1 %vm481_vm2, %v1215_v39 }
  0xde   : > { %1674 = vmatmul.mubr.msk.bf16.gmra.mrb[44].mxu1 %vm481_vm2, %v1217_v40 }
  0xdf   : > { %1677 = vmatprep.mubr.msk.bf16.mxu1 %vm481_vm2, %v1219_v41 }
  0xe6   : > { %v1954_v45 = vpop.f32.mrb[0].mxu0  ;;  %1678 = vmatmul.mubr.msk.bf16.gmra.mrb[48].mxu1 %vm481_vm2, %v1221_v43 }
  0xe7   : > { %v618_v46 = vrot.slane %v1954_v45, 1  ;;  %v1573_v47 = vpop.f32.mrb[1].mxu0 }
  0xe8   : > { %v550_v48 = vpop.f32.mrb[2].mxu0 }
  0xe9   : > { %v627_v49 = vrot.slane %v550_v48, 1  ;;  %v1574_v50 = vpop.f32.mrb[3].mxu0 }
  0xeb   : > { %v639_v51 = vsel %vm638_vm3, %v618_v46, %v627_v49 }
  0xec   : > { %670 = vrot.lane.b32.xlu1 %v639_v51, %s1758_s15 }
  0xee   : > { %v1962_v52 = vpop.f32.mrb[4].mxu0 }
  0xef   : > { %v619_v53 = vrot.slane %v1962_v52, 1  ;;  %v1577_v54 = vpop.f32.mrb[5].mxu0 }
  0xf0   : > { %710 = vrot.lane.b32.xlu1 %v1962_v52, %s1759_s22  ;;  %v558_v55 = vpop.f32.mrb[6].mxu0 }
  0xf1   : > { %v628_v56 = vrot.slane %v558_v55, 1  ;;  %v1578_v57 = vpop.f32.mrb[7].mxu0 }
  0xf3   : > { %v640_v58 = vsel %vm638_vm3, %v619_v53, %v628_v56 }
  0xf4   : > { %743 = vrot.lane.b32.xlu1 %v640_v58, %s1760_s23  ;;  %672 = vrot.lane.b32.xlu0 %v640_v58, %s1758_s15 }
  0xf6   : > { %v1971_v59 = vpop.f32.mrb[8].mxu0 }
  0xf7   : > { %v620_v60 = vrot.slane %v1971_v59, 1  ;;  %v1581_v61 = vpop.f32.mrb[9].mxu0 }
  0xf8   : > { %712 = vrot.lane.b32.xlu0 %v1971_v59, %s1759_s22  ;;  %v566_v62 = vpop.f32.mrb[10].mxu0 }
  0xf9   : > { %v629_v63 = vrot.slane %v566_v62, 1  ;;  %v1582_v0 = vpop.f32.mrb[11].mxu0 }
  0xfb   : > { %v641_v1 = vsel %vm638_vm3, %v620_v60, %v629_v63 }
  0xfc   : > { %745 = vrot.lane.b32.xlu0 %v641_v1, %s1760_s23  ;;  %674 = vrot.lane.b32.xlu1 %v641_v1, %s1758_s15 }
  0xfe   : > { %v1980_v2 = vpop.f32.mrb[12].mxu0 }
  0xff   : > { %v621_v3 = vrot.slane %v1980_v2, 1  ;;  %v1585_v4 = vpop.f32.mrb[13].mxu0 }
 0x100   : > { %714 = vrot.lane.b32.xlu1 %v1980_v2, %s1759_s22  ;;  %v574_v5 = vpop.f32.mrb[14].mxu0 }
 0x101   : > { %v630_v6 = vrot.slane %v574_v5, 1  ;;  %v1586_v7 = vpop.f32.mrb[15].mxu0 }
 0x103   : > { %v642_v8 = vsel %vm638_vm3, %v621_v3, %v630_v6 }
 0x104   : > { %747 = vrot.lane.b32.xlu1 %v642_v8, %s1760_s23  ;;  %676 = vrot.lane.b32.xlu0 %v642_v8, %s1758_s15 }
 0x106   : > { %v1989_v9 = vpop.f32.mrb[16].mxu0 }
 0x107   : > { %v622_v10 = vrot.slane %v1989_v9, 1  ;;  %v1589_v11 = vpop.f32.mrb[17].mxu0 }
 0x108   : > { %716 = vrot.lane.b32.xlu0 %v1989_v9, %s1759_s22  ;;  %v582_v12 = vpop.f32.mrb[18].mxu0 }
 0x109   : > { %v631_v13 = vrot.slane %v582_v12, 1  ;;  %v1590_v14 = vpop.f32.mrb[19].mxu0 }
 0x10b   : > { %v643_v15 = vsel %vm638_vm3, %v622_v10, %v631_v13 }
 0x10c   : > { %749 = vrot.lane.b32.xlu0 %v643_v15, %s1760_s23  ;;  %678 = vrot.lane.b32.xlu1 %v643_v15, %s1758_s15 }
 0x10e   : > { %v1998_v16 = vpop.f32.mrb[20].mxu0 }
 0x10f   : > { %v623_v17 = vrot.slane %v1998_v16, 1  ;;  %v1593_v18 = vpop.f32.mrb[21].mxu0 }
 0x110   : > { %718 = vrot.lane.b32.xlu1 %v1998_v16, %s1759_s22  ;;  %v590_v19 = vpop.f32.mrb[22].mxu0 }
 0x111   : > { %v632_v20 = vrot.slane %v590_v19, 1  ;;  %v1594_v21 = vpop.f32.mrb[23].mxu0 }
 0x113   : > { %v644_v22 = vsel %vm638_vm3, %v623_v17, %v632_v20 }
 0x114   : > { %751 = vrot.lane.b32.xlu1 %v644_v22, %s1760_s23  ;;  %680 = vrot.lane.b32.xlu0 %v644_v22, %s1758_s15 }
 0x116   : > { %v2007_v23 = vpop.f32.mrb[24].mxu0 }
 0x117   : > { %v624_v24 = vrot.slane %v2007_v23, 1  ;;  %v1597_v25 = vpop.f32.mrb[25].mxu0 }
 0x118   : > { %720 = vrot.lane.b32.xlu0 %v2007_v23, %s1759_s22  ;;  %v598_v26 = vpop.f32.mrb[26].mxu0 }
 0x119   : > { %v633_v27 = vrot.slane %v598_v26, 1  ;;  %v1598_v28 = vpop.f32.mrb[27].mxu0 }
 0x11b   : > { %v645_v29 = vsel %vm638_vm3, %v624_v24, %v633_v27 }
 0x11c   : > { %753 = vrot.lane.b32.xlu0 %v645_v29, %s1760_s23  ;;  %682 = vrot.lane.b32.xlu1 %v645_v29, %s1758_s15 }
 0x11e   : > { %v2016_v30 = vpop.f32.mrb[28].mxu0 }
 0x11f   : > { %v625_v31 = vrot.slane %v2016_v30, 1  ;;  %v1601_v32 = vpop.f32.mrb[29].mxu0 }
 0x120   : > { %722 = vrot.lane.b32.xlu1 %v2016_v30, %s1759_s22  ;;  %v606_v33 = vpop.f32.mrb[30].mxu0 }
 0x121   : > { %v634_v34 = vrot.slane %v606_v33, 1  ;;  %v1602_v35 = vpop.f32.mrb[31].mxu0  ;;  %v2082_v33 = vld [vmem:[%s2181_s6] ss:$0 sm:$0xff] }
 0x122   : > { %v654_v35 = vadd.f32 %v2082_v33, %v1954_v45 }
 0x123   : > { %v646_v36 = vsel %vm638_vm3, %v625_v31, %v634_v34 }
 0x124   : > { %755 = vrot.lane.b32.xlu1 %v646_v36, %s1760_s23  ;;  %684 = vrot.lane.b32.xlu0 %v646_v36, %s1758_s15 }
 0x126   : > { %v611_v37 = vpop.f32.mrb[32].mxu0 }
 0x127   : > { %v626_v38 = vrot.slane %v611_v37, 1  ;;  %v1605_v39 = vpop.f32.mrb[33].mxu0 }
 0x128   : > { %724 = vrot.lane.b32.xlu0 %v611_v37, %s1759_s22  ;;  %v614_v40 = vpop.f32.mrb[34].mxu0 }
 0x129   : > { %v635_v41 = vrot.slane %v614_v40, 1  ;;  %v1606_v42 = vpop.f32.mrb[35].mxu0 }
 0x12b   : > { %v647_v43 = vsel %vm638_vm3, %v626_v38, %v635_v41 }
 0x12c   : > { %757 = vrot.lane.b32.xlu0 %v647_v43, %s1760_s23 }
 0x12e   : > { %v2029_v46 = vpop.f32.mrb[36].mxu0 }
 0x12f   : > { %v1134_v47 = vrot.slane %v2029_v46, 1  ;;  %v2032_v48 = vpop.f32.mrb[37].mxu0 }
 0x130   : > { %v1133_v49 = vrot.slane %v2032_v48, 1  ;;  %v1650_v50 = vpop.f32.mrb[38].mxu0 }
 0x131   : > { %v1142_v51 = vrot.slane %v1650_v50, 1  ;;  %v1073_v53 = vpop.f32.mrb[39].mxu0 }
 0x132   : > { %v1141_v54 = vrot.slane %v1073_v53, 1 }
 0x133   : > { %v1150_v55 = vsel %vm638_vm3, %v1134_v47, %v1142_v51 }
 0x134   : > { %v1149_v56 = vsel %vm638_vm3, %v1133_v49, %v1141_v54  ;;  %1175 = vrot.lane.b32.xlu0 %v1150_v55, %s1758_s15  ;;  %v655_v49 = vadd.f32 %v2082_v33, %v1962_v52 }
 0x135   : > { %1173 = vrot.lane.b32.xlu1 %v1149_v56, %s1758_s15 }
 0x136   : > { %v2041_v57 = vpop.f32.mrb[40].mxu0 }
 0x137   : > { %v1136_v58 = vrot.slane %v2041_v57, 1  ;;  %v2044_v60 = vpop.f32.mrb[41].mxu0 }
 0x138   : > { %v1135_v61 = vrot.slane %v2044_v60, 1  ;;  %v1654_v62 = vpop.f32.mrb[42].mxu0 }
 0x139   : > { %v1144_v63 = vrot.slane %v1654_v62, 1  ;;  %v1089_v0 = vpop.f32.mrb[43].mxu0 }
 0x13a   : > { %v1143_v1 = vrot.slane %v1089_v0, 1  ;;  %v656_v0 = vadd.f32 %v2082_v33, %v1971_v59 }
 0x13b   : > { %v1152_v3 = vsel %vm638_vm3, %v1136_v58, %v1144_v63 }
 0x13c   : > { %v1151_v4 = vsel %vm638_vm3, %v1135_v61, %v1143_v1  ;;  %1179 = vrot.lane.b32.xlu0 %v1152_v3, %s1758_s15 }
 0x13d   : > { %1177 = vrot.lane.b32.xlu1 %v1151_v4, %s1758_s15 }
 0x13e   : > { %v2053_v5 = vpop.f32.mrb[44].mxu0 }
 0x13f   : > { %v1138_v6 = vrot.slane %v2053_v5, 1  ;;  %v2056_v7 = vpop.f32.mrb[45].mxu0 }
 0x140   : > { %v1137_v8 = vrot.slane %v2056_v7, 1  ;;  %v1658_v10 = vpop.f32.mrb[46].mxu0 }
 0x141   : > { %v1146_v11 = vrot.slane %v1658_v10, 1  ;;  %v1105_v12 = vpop.f32.mrb[47].mxu0 }
 0x142   : > { %v1145_v13 = vrot.slane %v1105_v12, 1 }
 0x143   : > { %v1154_v14 = vsel %vm638_vm3, %v1138_v6, %v1146_v11 }
 0x144   : > { %v1153_v15 = vsel %vm638_vm3, %v1137_v8, %v1145_v13  ;;  %1183 = vrot.lane.b32.xlu0 %v1154_v14, %s1758_s15 }
 0x145   : > { %1181 = vrot.lane.b32.xlu1 %v1153_v15, %s1758_s15  ;;  %v657_v15 = vadd.f32 %v2082_v33, %v1980_v2 }
 0x146   : > { %v2065_v17 = vpop.f32.mrb[48].mxu0 }
 0x147   : > { %v1140_v18 = vrot.slane %v2065_v17, 1  ;;  %v2068_v19 = vpop.f32.mrb[49].mxu0 }
 0x148   : > { %v1139_v20 = vrot.slane %v2068_v19, 1  ;;  %v1662_v21 = vpop.f32.mrb[50].mxu0 }
 0x149   : > { %v1148_v22 = vrot.slane %v1662_v21, 1  ;;  %v1121_v24 = vpop.f32.mrb[51].mxu0 }
 0x14a   : > { %v1147_v25 = vrot.slane %v1121_v24, 1 }
 0x14b   : > { %v2073_v26 = vsel %vm638_vm3, %v1140_v18, %v1148_v22 }
 0x14c   : > { %v2077_v27 = vsel %vm638_vm3, %v1139_v20, %v1147_v25 }
 0x159   : > { %v858_v28 = vpop.f32.mrb[0].mxu1 }
 0x15a   : > { %v1611_v29 = vpop.f32.mrb[1].mxu1 }
 0x15b   : > { %v861_v31 = vpop.f32.mrb[2].mxu1 }
 0x15c   : > { %v1612_v32 = vpop.f32.mrb[3].mxu1 }
 0x15e   : > { %v671_v34 = vpop.permute.xlu1 %670 }
 0x15f   : > { %v694_v44 = vadd.f32 %v671_v34, %v654_v35  ;;  %v658_v34 = vadd.f32 %v2082_v33, %v1989_v9 }
 0x161   : > { %v865_v36 = vpop.f32.mrb[4].mxu1 }
 0x162   : > { %v1615_v37 = vpop.f32.mrb[5].mxu1  ;;  %v711_v38 = vpop.permute.xlu1 %710  ;;  %936 = vrot.lane.b32.xlu1 %v865_v36, %s1758_s15 }
 0x163   : > { %v868_v39 = vpop.f32.mrb[6].mxu1  ;;  %v734_v41 = vadd.f32 %v711_v38, %v694_v44 }
 0x164   : > { %v1616_v40 = vpop.f32.mrb[7].mxu1 }
 0x166   : > { %v744_v42 = vpop.permute.xlu1 %743  ;;  %v673_v43 = vpop.permute.xlu0 %672 }
 0x167   : > { %v767_v47 = vadd.f32 %v744_v42, %v734_v41  ;;  %v695_v54 = vadd.f32 %v673_v43, %v655_v49 }
 0x169   : > { %v872_v50 = vpop.f32.mrb[8].mxu1  ;;  %v2089_v51 = vadd.f32 %v858_v28, %v767_v47  ;;  %v659_v47 = vadd.f32 %v2082_v33, %v1998_v16 }
 0x16a   : > { %v1619_v53 = vpop.f32.mrb[9].mxu1  ;;  %v713_v45 = vpop.permute.xlu0 %712  ;;  %938 = vrot.lane.b32.xlu0 %v872_v50, %s1758_s15 }
 0x16b   : > { %v875_v55 = vpop.f32.mrb[10].mxu1  ;;  %v735_v58 = vadd.f32 %v713_v45, %v695_v54 }
 0x16c   : > { %v1620_v56 = vpop.f32.mrb[11].mxu1 }
 0x16e   : > { %v746_v61 = vpop.permute.xlu0 %745  ;;  %v675_v62 = vpop.permute.xlu1 %674 }
 0x16f   : > { %v768_v63 = vadd.f32 %v746_v61, %v735_v58  ;;  %v696_v6 = vadd.f32 %v675_v62, %v656_v0  ;;  %v660_v58 = vadd.f32 %v2082_v33, %v2007_v23 }
 0x171   : > { %v879_v1 = vpop.f32.mrb[12].mxu1  ;;  %v2094_v3 = vadd.f32 %v865_v36, %v768_v63 }
 0x172   : > { %v1623_v52 = vpop.f32.mrb[13].mxu1  ;;  %v715_v4 = vpop.permute.xlu1 %714  ;;  %940 = vrot.lane.b32.xlu1 %v879_v1, %s1758_s15 }
 0x173   : > { %v882_v8 = vpop.f32.mrb[14].mxu1  ;;  %v736_v11 = vadd.f32 %v715_v4, %v696_v6 }
 0x174   : > { %v1624_v10 = vpop.f32.mrb[15].mxu1 }
 0x176   : > { %v748_v12 = vpop.permute.xlu1 %747  ;;  %v677_v13 = vpop.permute.xlu0 %676 }
 0x177   : > { %v769_v14 = vadd.f32 %v748_v12, %v736_v11  ;;  %v697_v22 = vadd.f32 %v677_v13, %v657_v15  ;;  %v661_v11 = vadd.f32 %v2082_v33, %v2016_v30 }
 0x179   : > { %v886_v18 = vpop.f32.mrb[16].mxu1  ;;  %v2099_v20 = vadd.f32 %v872_v50, %v769_v14 }
 0x17a   : > { %v1627_v59 = vpop.f32.mrb[17].mxu1  ;;  %v717_v21 = vpop.permute.xlu0 %716  ;;  %942 = vrot.lane.b32.xlu0 %v886_v18, %s1758_s15 }
 0x17b   : > { %v889_v24 = vpop.f32.mrb[18].mxu1  ;;  %v737_v28 = vadd.f32 %v717_v21, %v697_v22 }
 0x17c   : > { %v1628_v25 = vpop.f32.mrb[19].mxu1 }
 0x17e   : > { %v750_v29 = vpop.permute.xlu0 %749  ;;  %v679_v31 = vpop.permute.xlu1 %678 }
 0x17f   : > { %v770_v32 = vadd.f32 %v750_v29, %v737_v28  ;;  %v698_v38 = vadd.f32 %v679_v31, %v658_v34 }
 0x181   : > { %v893_v35 = vpop.f32.mrb[20].mxu1  ;;  %v2104_v36 = vadd.f32 %v879_v1, %v770_v32 }
 0x182   : > { %v1631_v2 = vpop.f32.mrb[21].mxu1  ;;  %v719_v37 = vpop.permute.xlu1 %718  ;;  %944 = vrot.lane.b32.xlu1 %v893_v35, %s1758_s15 }
 0x183   : > { %v896_v44 = vpop.f32.mrb[22].mxu1  ;;  %v738_v40 = vadd.f32 %v719_v37, %v698_v38 }
 0x184   : > { %v1632_v39 = vpop.f32.mrb[23].mxu1 }
 0x186   : > { %v752_v41 = vpop.permute.xlu1 %751  ;;  %v681_v42 = vpop.permute.xlu0 %680 }
 0x187   : > { %v771_v43 = vadd.f32 %v752_v41, %v738_v40  ;;  %v699_v45 = vadd.f32 %v681_v42, %v659_v47 }
 0x189   : > { %v900_v49 = vpop.f32.mrb[24].mxu1  ;;  %v2109_v50 = vadd.f32 %v886_v18, %v771_v43 }
 0x18a   : > { %v1635_v9 = vpop.f32.mrb[25].mxu1  ;;  %v721_v53 = vpop.permute.xlu0 %720  ;;  %946 = vrot.lane.b32.xlu0 %v900_v49, %s1758_s15 }
 0x18b   : > { %v903_v54 = vpop.f32.mrb[26].mxu1  ;;  %v739_v56 = vadd.f32 %v721_v53, %v699_v45 }
 0x18c   : > { %v1636_v55 = vpop.f32.mrb[27].mxu1 }
 0x18e   : > { %v754_v61 = vpop.permute.xlu0 %753  ;;  %v683_v62 = vpop.permute.xlu1 %682 }
 0x18f   : > { %v772_v63 = vadd.f32 %v754_v61, %v739_v56  ;;  %v700_v0 = vadd.f32 %v683_v62, %v660_v58 }
 0x191   : > { %v907_v1 = vpop.f32.mrb[28].mxu1  ;;  %v2114_v16 = vadd.f32 %v893_v35, %v772_v63 }
 0x192   : > { %v1639_v52 = vpop.f32.mrb[29].mxu1  ;;  %v723_v4 = vpop.permute.xlu1 %722  ;;  %948 = vrot.lane.b32.xlu1 %v907_v1, %s1758_s15 }
 0x193   : > { %v910_v6 = vpop.f32.mrb[30].mxu1  ;;  %v740_v10 = vadd.f32 %v723_v4, %v700_v0 }
 0x194   : > { %v1640_v8 = vpop.f32.mrb[31].mxu1 }
 0x196   : > { %v756_v12 = vpop.permute.xlu1 %755  ;;  %v685_v13 = vpop.permute.xlu0 %684  ;;  %1185 = vrot.lane.b32.xlu1 %v2077_v27, %s1758_s15 }
 0x197   : > { %v773_v23 = vadd.f32 %v756_v12, %v740_v10  ;;  %v701_v14 = vadd.f32 %v685_v13, %v661_v11 }
 0x199   : > { %v914_v15 = vpop.f32.mrb[32].mxu1  ;;  %v2121_v18 = vadd.f32 %v900_v49, %v773_v23 }
 0x19a   : > { %v1643_v59 = vpop.f32.mrb[33].mxu1  ;;  %v725_v21 = vpop.permute.xlu0 %724  ;;  %950 = vrot.lane.b32.xlu0 %v914_v15, %s1758_s15 }
 0x19b   : > { %v917_v22 = vpop.f32.mrb[34].mxu1  ;;  %v741_v25 = vadd.f32 %v725_v21, %v701_v14 }
 0x19c   : > { %v1644_v24 = vpop.f32.mrb[35].mxu1 }
 0x19e   : > { %v758_v28 = vpop.permute.xlu0 %757  ;;  %1187 = vrot.lane.b32.xlu0 %v2073_v26, %s1758_s15 }
 0x19f   : > { %v774_v30 = vadd.f32 %v758_v28, %v741_v25 }
 0x1a1   : > { %v1667_v33 = vpop.f32.mrb[36].mxu1  ;;  %v2126_v29 = vadd.f32 %v907_v1, %v774_v30 }
 0x1a2   : > { %v1283_v27 = vpop.f32.mrb[37].mxu1 }
 0x1a3   : > { %v1668_v31 = vpop.f32.mrb[38].mxu1 }
 0x1a4   : > { %v1286_v32 = vpop.f32.mrb[39].mxu1 }
 0x1a6   : > { %v1176_v9 = vpop.permute.xlu0 %1175 }
 0x1a7   : > { %v1174_v47 = vpop.permute.xlu1 %1173 }
 0x1a9   : > { %v1671_v34 = vpop.f32.mrb[40].mxu1 }
 0x1aa   : > { %v1297_v35 = vpop.f32.mrb[41].mxu1 }
 0x1ab   : > { %v1672_v2 = vpop.f32.mrb[42].mxu1 }
 0x1ac   : > { %v1300_v37 = vpop.f32.mrb[43].mxu1 }
 0x1ae   : > { %v1180_v45 = vpop.permute.xlu0 %1179 }
 0x1af   : > { %v1178_v49 = vpop.permute.xlu1 %1177 }
 0x1b1   : > { %v1675_v38 = vpop.f32.mrb[44].mxu1 }
 0x1b2   : > { %v1311_v44 = vpop.f32.mrb[45].mxu1 }
 0x1b3   : > { %v1676_v39 = vpop.f32.mrb[46].mxu1 }
 0x1b4   : > { %v1314_v40 = vpop.f32.mrb[47].mxu1 }
 0x1b6   : > { %v1184_v56 = vpop.permute.xlu0 %1183 }
 0x1b7   : > { %v1182_v53 = vpop.permute.xlu1 %1181 }
 0x1b9   : > { %v1679_v41 = vpop.f32.mrb[48].mxu1 }
 0x1ba   : > { %v1325_v42 = vpop.f32.mrb[49].mxu1 }
 0x1bb   : > { %v1680_v43 = vpop.f32.mrb[50].mxu1 }
 0x1bc   : > { %v1328_v26 = vpop.f32.mrb[51].mxu1 }
 0x1d4   : > { %v937_v54 = vpop.permute.xlu1 %936 }
 0x1d5   : > { %v960_v55 = vadd.f32 %v937_v54, %v2089_v51 }
 0x1d7   : > { %v1157_v58 = vadd.f32 %v2032_v48, %v960_v55 }
 0x1d9   : > { %v1197_v61 = vadd.f32 %v1174_v47, %v1157_v58 }
 0x1db   : > { %v1338_v62 = vadd.f32 %v1283_v27, %v1197_v61 }
 0x1dc   : > { %v939_v63 = vpop.permute.xlu0 %938 }
 0x1dd   : > { %1346 = vst.msk [vmem:[%s2134_s10] sm:$0xff] %vm481_vm2, %v1338_v62  ;;  %v961_v0 = vadd.f32 %v939_v63, %v2094_v3 }
 0x1df   : > { %v1158_v51 = vadd.f32 %v2029_v46, %v961_v0 }
 0x1e1   : > { %v1198_v48 = vadd.f32 %v1176_v9, %v1158_v51 }
 0x1e3   : > { %v1339_v1 = vadd.f32 %v1667_v33, %v1198_v48 }
 0x1e4   : > { %v941_v52 = vpop.permute.xlu1 %940 }
 0x1e5   : > { %1347 = vst.msk [vmem:[%s2134_s10 + $0x8] sm:$0xff] %vm481_vm2, %v1339_v1  ;;  %v962_v4 = vadd.f32 %v941_v52, %v2099_v20 }
 0x1e7   : > { %v1159_v6 = vadd.f32 %v2044_v60, %v962_v4 }
 0x1e9   : > { %v1199_v8 = vadd.f32 %v1178_v49, %v1159_v6 }
 0x1eb   : > { %v1340_v10 = vadd.f32 %v1297_v35, %v1199_v8 }
 0x1ec   : > { %v943_v11 = vpop.permute.xlu0 %942 }
 0x1ed   : > { %1348 = vst.msk [vmem:[%s2134_s10 + $0x10] sm:$0xff] %vm481_vm2, %v1340_v10  ;;  %v963_v3 = vadd.f32 %v943_v11, %v2104_v36 }
 0x1ef   : > { %v1160_v46 = vadd.f32 %v2041_v57, %v963_v3 }
 0x1f1   : > { %v1200_v12 = vadd.f32 %v1180_v45, %v1160_v46 }
 0x1f3   : > { %v1341_v13 = vadd.f32 %v1671_v34, %v1200_v12 }
 0x1f4   : > { %v945_v23 = vpop.permute.xlu1 %944 }
 0x1f5   : > { %1349 = vst.msk [vmem:[%s2134_s10 + $0x18] sm:$0xff] %vm481_vm2, %v1341_v13  ;;  %v964_v20 = vadd.f32 %v945_v23, %v2109_v50 }
 0x1f7   : > { %v1161_v60 = vadd.f32 %v2056_v7, %v964_v20 }
 0x1f9   : > { %v1201_v14 = vadd.f32 %v1182_v53, %v1161_v60 }
 0x1fb   : > { %v1342_v15 = vadd.f32 %v1311_v44, %v1201_v14 }
 0x1fc   : > { %v947_v59 = vpop.permute.xlu0 %946 }
 0x1fd   : > { %1350 = vst.msk [vmem:[%s2134_s10 + $0x20] sm:$0xff] %vm481_vm2, %v1342_v15  ;;  %v965_v36 = vadd.f32 %v947_v59, %v2114_v16 }
 0x1ff   : > { %v1162_v57 = vadd.f32 %v2053_v5, %v965_v36 }
 0x201   : > { %v1202_v21 = vadd.f32 %v1184_v56, %v1162_v57 }
 0x203   : > { %v1343_v22 = vadd.f32 %v1675_v38, %v1202_v21 }
 0x204   : > { %v949_v24 = vpop.permute.xlu1 %948 }
 0x205   : > { %1351 = vst.msk [vmem:[%s2134_s10 + $0x28] sm:$0xff] %vm481_vm2, %v1343_v22  ;;  %v966_v50 = vadd.f32 %v949_v24, %v2121_v18 }
 0x207   : > { %v1163_v7 = vadd.f32 %v2068_v19, %v966_v50 }
 0x208   : > { %v1186_v25 = vpop.permute.xlu1 %1185 }
 0x209   : > { %v1203_v28 = vadd.f32 %v1186_v25, %v1163_v7 }
 0x20b   : > { %v1344_v30 = vadd.f32 %v1325_v42, %v1203_v28 }
 0x20c   : > { %v951_v33 = vpop.permute.xlu0 %950 }
 0x20d   : > { %1352 = vst.msk [vmem:[%s2134_s10 + $0x30] sm:$0xff] %vm481_vm2, %v1344_v30  ;;  %v967_v16 = vadd.f32 %v951_v33, %v2126_v29 }
 0x20f   : > { %v1164_v5 = vadd.f32 %v2065_v17, %v967_v16 }
 0x210   : > { %v1188_v27 = vpop.permute.xlu0 %1187 }
 0x211   : > { %v1204_v31 = vadd.f32 %v1188_v27, %v1164_v5 }
 0x213   : > { %v1345_v32 = vadd.f32 %v1679_v41, %v1204_v31 }
 0x215   : > { %1353 = vst.msk [vmem:[%s2134_s10 + $0x38] sm:$0xff] %vm481_vm2, %v1345_v32 }
 0x216 PF: > { %s17_s26 = sadd.s32 1, %s1754_s26   ;;  %s2183_s24 = smov %s1750_s25 }
 0x217   : > { %p14_p5 = scmp.ge.s32.totalorder %s17_s26, 4   ;;  %s2184_s25 = smov %s2186_s27 }
 0x219   :  { %16 = sbr.rel (!%p14_p5) target bundleno = 2 (0x2), region = 81 }

</bundles_post_ra>
